<compile_context>
chip_gen: v7x
topology: tpu7x:2x2x1
jax: 0.10.0
libtpu: 0.0.40
codegen_flags: <defaults>
</compile_context>

<pallas_src>
import jax
import jax.numpy as jnp
from jax.experimental import pallas as pl
from jax.experimental.pallas import tpu as pltpu

LANE = 128
VMEM_LIMIT = 32 * 1024 * 1024  # raise v5e's 16 MiB scoped default; safe on v6e/v7x


def _round_up(x, m):
    return (x + m - 1) // m * m


def _choose_tile(m, cap, mult=8):
    """Row tile: multiple of `mult`, <= cap, and (when m allows) >= 2 grid
    steps so dimension_semantics=("parallel",) can feed both v7x TCs."""
    half = _round_up((m + 1) // 2, mult)
    return max(mult, min(cap, half))


# ---------------------------------------------------------------------------
# Pallas kernels
# ---------------------------------------------------------------------------
def _conv_relu_pool_kernel(x_ref, w_ref, b_ref, o_ref):
    """Fused im2col-conv + 2x2 maxpool + bias + relu.

    x_ref: (4, tm, K) bf16 -- im2col patches for the 4 positions inside each
    2x2 pool window, all in identical pooled-row order.  One MXU matmul over
    the stacked offsets (leading-dim collapse is a free relayout, tm % 8 == 0),
    4-way max, then bias + relu applied ONCE after the max (bit-identical:
    bias is shared across offsets and relu is monotone)."""
    four, tm, k = x_ref.shape
    n = o_ref.shape[-1]
    x = x_ref[...].reshape(four * tm, k)
    acc = jnp.dot(x, w_ref[...], preferred_element_type=jnp.float32)
    pooled = jnp.max(acc.reshape(four, tm, n), axis=0)       # 2x2 maxpool
    o_ref[...] = jnp.maximum(pooled + b_ref[...], 0.0).astype(o_ref.dtype)


def _fc_tail_kernel(x_ref, w1_ref, b1_ref, w2_ref, b2_ref, w3_ref, b3_ref,
                    o_ref):
    """fc1 -> relu -> fc2 -> relu -> fc3 fused; intermediates stay on-chip."""
    h = jnp.dot(x_ref[...], w1_ref[...], preferred_element_type=jnp.float32)
    h = jnp.maximum(h + b1_ref[...], 0.0).astype(jnp.bfloat16)
    h = jnp.dot(h, w2_ref[...], preferred_element_type=jnp.float32)
    h = jnp.maximum(h + b2_ref[...], 0.0).astype(jnp.bfloat16)
    h = jnp.dot(h, w3_ref[...], preferred_element_type=jnp.float32) + b3_ref[...]
    o_ref[...] = h.astype(o_ref.dtype)


# ---------------------------------------------------------------------------
# pallas_call wrappers
# ---------------------------------------------------------------------------
def conv_relu_pool(slab, w, b, *, tile_cap=2048, row_mult=16):
    """pooled = maxpool2x2(relu(conv(x) + b)) as one fused, M-tiled call.

    slab: (4, M, K) bf16 stacked pool-offset patches, M = B*(oh/2)*(ow/2).
    w: (K, 128) lane-padded bf16 weights; b: (1, 128) f32 bias.
    Returns bf16 (Mp, 128); padded rows/lanes are handled by the caller."""
    _, M, K = slab.shape
    N = w.shape[1]
    tm = _choose_tile(M, tile_cap, row_mult)
    Mp = _round_up(M, tm)
    if Mp != M:
        slab = jnp.pad(slab, ((0, 0), (0, Mp - M), (0, 0)))
    return pl.pallas_call(
        _conv_relu_pool_kernel,
        out_shape=jax.ShapeDtypeStruct((Mp, N), jnp.bfloat16),
        grid=(Mp // tm,),
        in_specs=[pl.BlockSpec((4, tm, K), lambda i: (0, i, 0)),
                  pl.BlockSpec((K, N), lambda i: (0, 0)),
                  pl.BlockSpec((1, N), lambda i: (0, 0))],
        out_specs=pl.BlockSpec((tm, N), lambda i: (i, 0)),
        compiler_params=pltpu.CompilerParams(
            dimension_semantics=("parallel",),
            vmem_limit_bytes=VMEM_LIMIT),
    )(slab, w, b)


def fc_tail(x, w1, b1, w2, b2, w3, b3, *, tile_cap=1024):
    """Fused fc1->relu->fc2->relu->fc3, tiled over rows (images)."""
    M, K = x.shape
    tm = _choose_tile(M, tile_cap, 8)
    Mp = _round_up(M, tm)
    if Mp != M:
        x = jnp.pad(x, ((0, Mp - M), (0, 0)))
    n3 = w3.shape[1]
    return pl.pallas_call(
        _fc_tail_kernel,
        out_shape=jax.ShapeDtypeStruct((Mp, n3), jnp.float32),
        grid=(Mp // tm,),
        in_specs=[pl.BlockSpec((tm, K), lambda i: (i, 0)),
                  pl.BlockSpec(w1.shape, lambda i: (0, 0)),
                  pl.BlockSpec(b1.shape, lambda i: (0, 0)),
                  pl.BlockSpec(w2.shape, lambda i: (0, 0)),
                  pl.BlockSpec(b2.shape, lambda i: (0, 0)),
                  pl.BlockSpec(w3.shape, lambda i: (0, 0)),
                  pl.BlockSpec(b3.shape, lambda i: (0, 0))],
        out_specs=pl.BlockSpec((tm, n3), lambda i: (i, 0)),
        compiler_params=pltpu.CompilerParams(
            dimension_semantics=("parallel",),
            vmem_limit_bytes=VMEM_LIMIT),
    )(x, w1, b1, w2, b2, w3, b3)


# ---------------------------------------------------------------------------
# wrapper-side glue (direct pool-offset slab build, parameter prep)
# ---------------------------------------------------------------------------
def pooled_patch_slabs(x_nhwc, k, channels):
    """Build the 4 pool-offset im2col slabs directly with strided slices (the
    full (B, oh, ow, K) im2col tensor is never materialized).  Column order is
    (c, kh, kw), matching the flatten of PyTorch conv weights.  Only the first
    `channels` channels of x are read, so the lane-padded conv output can be
    consumed directly.  Returns (4, B*ph*pw, channels*k*k)."""
    B, H, W, _ = x_nhwc.shape
    ph, pw = (H - k + 1) // 2, (W - k + 1) // 2
    slabs = []
    for dy in (0, 1):
        for dx in (0, 1):
            cols = [x_nhwc[:, dy + i: dy + i + 2 * ph: 2,
                              dx + j: dx + j + 2 * pw: 2, c]
                    for c in range(channels)
                    for i in range(k) for j in range(k)]
            slabs.append(jnp.stack(cols, axis=-1).reshape(B * ph * pw, -1))
    return jnp.stack(slabs, axis=0)


def prepare_params(params):
    """One-time re-layout of PyTorch-style params into what the kernels eat:
    bf16 (K, 128) lane-padded weights, f32 (1, 128) biases, and an fc1 weight
    with the CHW flatten order + conv2 channel padding folded in."""
    bf16, f32 = jnp.bfloat16, jnp.float32

    def pad2d(w, rows, cols):
        return jnp.pad(w, ((0, rows - w.shape[0]), (0, cols - w.shape[1])))

    def padb(b):
        return jnp.pad(b, (0, LANE - b.shape[0])).reshape(1, LANE).astype(f32)

    # conv weights: (out, in, kh, kw) -> (K=in*kh*kw, out) -> lane-pad out
    c1_w = pad2d(params["c1_w"].reshape(6, 25).T, 25, LANE).astype(bf16)
    c3_w = pad2d(params["c3_w"].reshape(16, 150).T, 150, LANE).astype(bf16)

    # fc1: fold PyTorch's x.view(-1, 16*4*4) channel-major flatten AND the
    # 128-lane channel padding of the conv2 output into the weight layout:
    # kernel input feature g = (y*4 + x)*128 + c  <->  torch feature c*16+y*4+x
    w1 = params["fc1_w"].reshape(120, 16, 4, 4)          # (o, c, y, x)
    w1 = jnp.transpose(w1, (2, 3, 1, 0))                 # (y, x, c, o)
    w1 = jnp.pad(w1, ((0, 0), (0, 0), (0, LANE - 16), (0, LANE - 120)))
    fc1_w = w1.reshape(16 * LANE, LANE).astype(bf16)     # (2048, 128)

    fc2_w = pad2d(params["fc2_w"].T, LANE, LANE).astype(bf16)
    fc3_w = pad2d(params["fc3_w"].T, LANE, LANE).astype(bf16)

    return {
        "c1_w": c1_w, "c1_b": padb(params["c1_b"]),
        "c3_w": c3_w, "c3_b": padb(params["c3_b"]),
        "fc1_w": fc1_w, "fc1_b": padb(params["fc1_b"]),
        "fc2_w": fc2_w, "fc2_b": padb(params["fc2_b"]),
        "fc3_w": fc3_w, "fc3_b": padb(params["fc3_b"]),
    }


def init_params(key):
    ks = jax.random.split(key, 10)

    def u(k, shape, fan_in):
        bound = 1.0 / jnp.sqrt(float(fan_in))
        return jax.random.uniform(k, shape, jnp.float32, -bound, bound)

    return {
        "c1_w": u(ks[0], (6, 1, 5, 5), 1 * 5 * 5),
        "c1_b": u(ks[1], (6,), 1 * 5 * 5),
        "c3_w": u(ks[2], (16, 6, 5, 5), 6 * 5 * 5),
        "c3_b": u(ks[3], (16,), 6 * 5 * 5),
        "fc1_w": u(ks[4], (120, 16 * 4 * 4), 16 * 4 * 4),
        "fc1_b": u(ks[5], (120,), 16 * 4 * 4),
        "fc2_w": u(ks[6], (84, 120), 120),
        "fc2_b": u(ks[7], (84,), 120),
        "fc3_w": u(ks[8], (10, 84), 84),
        "fc3_b": u(ks[9], (10,), 84),
    }


# ---------------------------------------------------------------------------
# forward pass
# ---------------------------------------------------------------------------
def lenet_forward(prep, x_nchw):
    B = x_nchw.shape[0]
    x = jnp.transpose(x_nchw, (0, 2, 3, 1)).astype(jnp.bfloat16)  # NHWC bf16

    # conv1 (1->6, 5x5) + relu + 2x2 maxpool: one fused, M-tiled kernel
    slab = pooled_patch_slabs(x, 5, 1)                    # (4, B*144, 25)
    a1 = conv_relu_pool(slab, prep["c1_w"], prep["c1_b"])
    h1 = a1[:B * 144].reshape(B, 12, 12, LANE)            # lane-padded, bf16

    # conv2 (6->16, 5x5) + relu + 2x2 maxpool (reads only channels 0..5 of h1)
    slab = pooled_patch_slabs(h1, 5, 6)                   # (4, B*16, 150)
    a2 = conv_relu_pool(slab, prep["c3_w"], prep["c3_b"])

    # fc1 -> relu -> fc2 -> relu -> fc3, one fused kernel.  a2 rows are
    # (img, py, px) and stay lane-padded: the flatten is a plain reshape, the
    # CHW permutation / channel selection lives in prep["fc1_w"].  Row padding
    # of a2 is whole fake images (row_mult=16) and is discarded at the end.
    fc_in = a2.reshape(a2.shape[0] // 16, 16 * LANE)      # (Bp, 2048), Bp >= B
    out = fc_tail(fc_in, prep["fc1_w"], prep["fc1_b"],
                  prep["fc2_w"], prep["fc2_b"],
                  prep["fc3_w"], prep["fc3_b"])
    return out[:B, :10]


def lenet_reference(params, x_nchw):
    """Pure-JAX f32 reference (no Pallas) for a correctness sanity check."""
    hp = jax.lax.Precision.HIGHEST
    x = jnp.transpose(x_nchw, (0, 2, 3, 1)).astype(jnp.float32)

    def im2col(x, k):
        B, H, W, C = x.shape
        oh, ow = H - k + 1, W - k + 1
        cols = [x[:, i:i + oh, j:j + ow, c]
                for c in range(C) for i in range(k) for j in range(k)]
        return jnp.stack(cols, axis=-1)

    def conv_relu_pool_ref(x, w, b):
        B = x.shape[0]
        cout, k = w.shape[0], w.shape[-1]
        p = im2col(x, k)
        oh, ow = p.shape[1], p.shape[2]
        y = jnp.dot(p.reshape(-1, p.shape[-1]), w.reshape(cout, -1).T,
                    precision=hp) + b
        y = jnp.maximum(y, 0.0).reshape(B, oh, ow, cout)
        return jnp.maximum(jnp.maximum(y[:, 0::2, 0::2], y[:, 0::2, 1::2]),
                           jnp.maximum(y[:, 1::2, 0::2], y[:, 1::2, 1::2]))

    h = conv_relu_pool_ref(x, params["c1_w"], params["c1_b"])
    h = conv_relu_pool_ref(h, params["c3_w"], params["c3_b"])
    B = x.shape[0]
    flat = jnp.transpose(h, (0, 3, 1, 2)).reshape(B, -1)
    h = jnp.maximum(jnp.dot(flat, params["fc1_w"].T, precision=hp)
                    + params["fc1_b"], 0.0)
    h = jnp.maximum(jnp.dot(h, params["fc2_w"].T, precision=hp)
                    + params["fc2_b"], 0.0)
    return jnp.dot(h, params["fc3_w"].T, precision=hp) + params["fc3_b"]


if __name__ == "__main__":
    key = jax.random.PRNGKey(0)
    pkey, xkey = jax.random.split(key)
    params = init_params(pkey)
    prep = prepare_params(params)

    # fc1 expects 16*4*4 flat features => input must be (B, 1, 28, 28)
    x = jax.random.normal(xkey, (2, 1, 28, 28), jnp.float32)

    out = jax.jit(lenet_forward)(prep, x)
    out = jax.block_until_ready(out)
    assert out.shape == (2, 10)

    ref = lenet_reference(params, x)
    # bf16 activations/weights with f32 accumulation vs HIGHEST-precision f32
    # reference -> 2e-2 tolerance.
    assert jnp.allclose(out, ref, rtol=2e-2, atol=2e-2), \
        "Pallas output mismatch vs pure-JAX reference"

    print("KERNEL_OK")
</pallas_src>

<mosaic_0001>
module attributes {stable_mosaic.version = 11 : i64} {
  func.func @_conv_relu_pool_kernel(%arg0: i32, %arg1: memref<4x144x25xbf16, #tpu.memory_space<vmem>>, %arg2: memref<25x128xbf16, #tpu.memory_space<vmem>>, %arg3: memref<1x128xf32, #tpu.memory_space<vmem>>, %arg4: memref<144x128xbf16, #tpu.memory_space<vmem>>) attributes {dimension_semantics = [#tpu.dimension_semantics<parallel>], iteration_bounds = array<i64: 2>, scalar_prefetch = 0 : i64, scratch_operands = 0 : i64, tpu.core_type = #tpu.core_type<tc>, window_params = [{transform_indices = @transform_0, window_bounds = array<i64: 4, 144, 25>}, {pipeline_mode = #tpu.pipeline_mode<synchronous>, transform_indices = @transform_1, window_bounds = array<i64: 25, 128>}, {pipeline_mode = #tpu.pipeline_mode<synchronous>, transform_indices = @transform_2, window_bounds = array<i64: 1, 128>}, {transform_indices = @transform_3, window_bounds = array<i64: 144, 128>}]} {
    %c0 = arith.constant 0 : index
    %c0_0 = arith.constant 0 : index
    %c0_1 = arith.constant 0 : index
    %0 = vector.load %arg1[%c0, %c0_0, %c0_1] : memref<4x144x25xbf16, #tpu.memory_space<vmem>>, vector<4x144x25xbf16>
    %1 = vector.shape_cast %0 : vector<4x144x25xbf16> to vector<576x25xbf16>
    %c0_2 = arith.constant 0 : index
    %c0_3 = arith.constant 0 : index
    %2 = vector.load %arg2[%c0_2, %c0_3] : memref<25x128xbf16, #tpu.memory_space<vmem>>, vector<25x128xbf16>
    %cst = arith.constant dense<0.000000e+00> : vector<576x128xf32>
    %3 = tpu.matmul %1, %2, %cst {dimension_numbers = #tpu.dot_dimension_numbers<[1], [0], [0], [1], [0, 0, 1, 1], [], []>} : vector<576x25xbf16>, vector<25x128xbf16>, vector<576x128xf32> -> vector<576x128xf32>
    %4 = vector.shape_cast %3 : vector<576x128xf32> to vector<4x144x128xf32>
    %cst_4 = arith.constant dense<0xFF800000> : vector<144x128xf32>
    %5 = vector.multi_reduction <maximumf>, %4, %cst_4 [0] : vector<4x144x128xf32> to vector<144x128xf32>
    %c0_5 = arith.constant 0 : index
    %c0_6 = arith.constant 0 : index
    %6 = vector.load %arg3[%c0_5, %c0_6] : memref<1x128xf32, #tpu.memory_space<vmem>>, vector<1x128xf32>
    %7 = vector.broadcast %6 : vector<1x128xf32> to vector<144x128xf32>
    %8 = arith.addf %5, %7 : vector<144x128xf32>
    %cst_7 = arith.constant 0.000000e+00 : f32
    %9 = vector.broadcast %cst_7 : f32 to vector<144x128xf32>
    %10 = arith.maximumf %8, %9 : vector<144x128xf32>
    %11 = arith.truncf %10 : vector<144x128xf32> to vector<144x128xbf16>
    %c0_8 = arith.constant 0 : index
    %c0_9 = arith.constant 0 : index
    %12 = vector.load %arg4[%c0_8, %c0_9] : memref<144x128xbf16, #tpu.memory_space<vmem>>, vector<144x128xbf16>
    tpu.vector_store %arg4[%c0_8, %c0_9], %11 {strides = array<i32>} : memref<144x128xbf16, #tpu.memory_space<vmem>>, vector<144x128xbf16>,
    return
  }
  func.func @transform_0(%arg0: i32) -> (i32, i32, i32) {
    %c0_i32 = arith.constant 0 : i32
    %c0_i32_0 = arith.constant 0 : i32
    %c0_i32_1 = arith.constant 0 : i32
    return %c0_i32, %arg0, %c0_i32_0 : i32, i32, i32
  }
  func.func @transform_1(%arg0: i32) -> (i32, i32) {
    %c0_i32 = arith.constant 0 : i32
    %c0_i32_0 = arith.constant 0 : i32
    %c0_i32_1 = arith.constant 0 : i32
    return %c0_i32, %c0_i32_0 : i32, i32
  }
  func.func @transform_2(%arg0: i32) -> (i32, i32) {
    %c0_i32 = arith.constant 0 : i32
    %c0_i32_0 = arith.constant 0 : i32
    %c0_i32_1 = arith.constant 0 : i32
    return %c0_i32, %c0_i32_0 : i32, i32
  }
  func.func @transform_3(%arg0: i32) -> (i32, i32) {
    %c0_i32 = arith.constant 0 : i32
    %c0_i32_0 = arith.constant 0 : i32
    return %arg0, %c0_i32 : i32, i32
  }
}

module attributes {stable_mosaic.version = 11 : i64} {
  func.func @_fc_tail_kernel(%arg0: i32, %arg1: memref<8x2048xbf16, #tpu.memory_space<vmem>>, %arg2: memref<2048x128xbf16, #tpu.memory_space<vmem>>, %arg3: memref<1x128xf32, #tpu.memory_space<vmem>>, %arg4: memref<128x128xbf16, #tpu.memory_space<vmem>>, %arg5: memref<1x128xf32, #tpu.memory_space<vmem>>, %arg6: memref<128x128xbf16, #tpu.memory_space<vmem>>, %arg7: memref<1x128xf32, #tpu.memory_space<vmem>>, %arg8: memref<8x128xf32, #tpu.memory_space<vmem>>) attributes {dimension_semantics = [#tpu.dimension_semantics<parallel>], iteration_bounds = array<i64: 1>, scalar_prefetch = 0 : i64, scratch_operands = 0 : i64, tpu.core_type = #tpu.core_type<tc>, window_params = [{transform_indices = @transform_0, window_bounds = array<i64: 8, 2048>}, {pipeline_mode = #tpu.pipeline_mode<synchronous>, transform_indices = @transform_1, window_bounds = array<i64: 2048, 128>}, {pipeline_mode = #tpu.pipeline_mode<synchronous>, transform_indices = @transform_2, window_bounds = array<i64: 1, 128>}, {pipeline_mode = #tpu.pipeline_mode<synchronous>, transform_indices = @transform_3, window_bounds = array<i64: 128, 128>}, {pipeline_mode = #tpu.pipeline_mode<synchronous>, transform_indices = @transform_4, window_bounds = array<i64: 1, 128>}, {pipeline_mode = #tpu.pipeline_mode<synchronous>, transform_indices = @transform_5, window_bounds = array<i64: 128, 128>}, {pipeline_mode = #tpu.pipeline_mode<synchronous>, transform_indices = @transform_6, window_bounds = array<i64: 1, 128>}, {transform_indices = @transform_7, window_bounds = array<i64: 8, 128>}]} {
    %c0 = arith.constant 0 : index
    %c0_0 = arith.constant 0 : index
    %0 = vector.load %arg1[%c0, %c0_0] : memref<8x2048xbf16, #tpu.memory_space<vmem>>, vector<8x2048xbf16>
    %c0_1 = arith.constant 0 : index
    %c0_2 = arith.constant 0 : index
    %1 = vector.load %arg2[%c0_1, %c0_2] : memref<2048x128xbf16, #tpu.memory_space<vmem>>, vector<2048x128xbf16>
    %cst = arith.constant dense<0.000000e+00> : vector<8x128xf32>
    %2 = tpu.matmul %0, %1, %cst {dimension_numbers = #tpu.dot_dimension_numbers<[1], [0], [0], [1], [0, 0, 1, 1], [], []>} : vector<8x2048xbf16>, vector<2048x128xbf16>, vector<8x128xf32> -> vector<8x128xf32>
    %c0_3 = arith.constant 0 : index
    %c0_4 = arith.constant 0 : index
    %3 = vector.load %arg3[%c0_3, %c0_4] : memref<1x128xf32, #tpu.memory_space<vmem>>, vector<1x128xf32>
    %4 = vector.broadcast %3 : vector<1x128xf32> to vector<8x128xf32>
    %5 = arith.addf %2, %4 : vector<8x128xf32>
    %cst_5 = arith.constant 0.000000e+00 : f32
    %6 = vector.broadcast %cst_5 : f32 to vector<8x128xf32>
    %7 = arith.maximumf %5, %6 : vector<8x128xf32>
    %8 = arith.truncf %7 : vector<8x128xf32> to vector<8x128xbf16>
    %c0_6 = arith.constant 0 : index
    %c0_7 = arith.constant 0 : index
    %9 = vector.load %arg4[%c0_6, %c0_7] : memref<128x128xbf16, #tpu.memory_space<vmem>>, vector<128x128xbf16>
    %cst_8 = arith.constant dense<0.000000e+00> : vector<8x128xf32>
    %10 = tpu.matmul %8, %9, %cst_8 {dimension_numbers = #tpu.dot_dimension_numbers<[1], [0], [0], [1], [0, 0, 1, 1], [], []>} : vector<8x128xbf16>, vector<128x128xbf16>, vector<8x128xf32> -> vector<8x128xf32>
    %c0_9 = arith.constant 0 : index
    %c0_10 = arith.constant 0 : index
    %11 = vector.load %arg5[%c0_9, %c0_10] : memref<1x128xf32, #tpu.memory_space<vmem>>, vector<1x128xf32>
    %12 = vector.broadcast %11 : vector<1x128xf32> to vector<8x128xf32>
    %13 = arith.addf %10, %12 : vector<8x128xf32>
    %cst_11 = arith.constant 0.000000e+00 : f32
    %14 = vector.broadcast %cst_11 : f32 to vector<8x128xf32>
    %15 = arith.maximumf %13, %14 : vector<8x128xf32>
    %16 = arith.truncf %15 : vector<8x128xf32> to vector<8x128xbf16>
    %c0_12 = arith.constant 0 : index
    %c0_13 = arith.constant 0 : index
    %17 = vector.load %arg6[%c0_12, %c0_13] : memref<128x128xbf16, #tpu.memory_space<vmem>>, vector<128x128xbf16>
    %cst_14 = arith.constant dense<0.000000e+00> : vector<8x128xf32>
    %18 = tpu.matmul %16, %17, %cst_14 {dimension_numbers = #tpu.dot_dimension_numbers<[1], [0], [0], [1], [0, 0, 1, 1], [], []>} : vector<8x128xbf16>, vector<128x128xbf16>, vector<8x128xf32> -> vector<8x128xf32>
    %c0_15 = arith.constant 0 : index
    %c0_16 = arith.constant 0 : index
    %19 = vector.load %arg7[%c0_15, %c0_16] : memref<1x128xf32, #tpu.memory_space<vmem>>, vector<1x128xf32>
    %20 = vector.broadcast %19 : vector<1x128xf32> to vector<8x128xf32>
    %21 = arith.addf %18, %20 : vector<8x128xf32>
    %c0_17 = arith.constant 0 : index
    %c0_18 = arith.constant 0 : index
    %22 = vector.load %arg8[%c0_17, %c0_18] : memref<8x128xf32, #tpu.memory_space<vmem>>, vector<8x128xf32>
    tpu.vector_store %arg8[%c0_17, %c0_18], %21 {strides = array<i32>} : memref<8x128xf32, #tpu.memory_space<vmem>>, vector<8x128xf32>,
    return
  }
  func.func @transform_0(%arg0: i32) -> (i32, i32) {
    %c0_i32 = arith.constant 0 : i32
    %c0_i32_0 = arith.constant 0 : i32
    return %arg0, %c0_i32 : i32, i32
  }
  func.func @transform_1(%arg0: i32) -> (i32, i32) {
    %c0_i32 = arith.constant 0 : i32
    %c0_i32_0 = arith.constant 0 : i32
    %c0_i32_1 = arith.constant 0 : i32
    return %c0_i32, %c0_i32_0 : i32, i32
  }
  func.func @transform_2(%arg0: i32) -> (i32, i32) {
    %c0_i32 = arith.constant 0 : i32
    %c0_i32_0 = arith.constant 0 : i32
    %c0_i32_1 = arith.constant 0 : i32
    return %c0_i32, %c0_i32_0 : i32, i32
  }
  func.func @transform_3(%arg0: i32) -> (i32, i32) {
    %c0_i32 = arith.constant 0 : i32
    %c0_i32_0 = arith.constant 0 : i32
    %c0_i32_1 = arith.constant 0 : i32
    return %c0_i32, %c0_i32_0 : i32, i32
  }
  func.func @transform_4(%arg0: i32) -> (i32, i32) {
    %c0_i32 = arith.constant 0 : i32
    %c0_i32_0 = arith.constant 0 : i32
    %c0_i32_1 = arith.constant 0 : i32
    return %c0_i32, %c0_i32_0 : i32, i32
  }
  func.func @transform_5(%arg0: i32) -> (i32, i32) {
    %c0_i32 = arith.constant 0 : i32
    %c0_i32_0 = arith.constant 0 : i32
    %c0_i32_1 = arith.constant 0 : i32
    return %c0_i32, %c0_i32_0 : i32, i32
  }
  func.func @transform_6(%arg0: i32) -> (i32, i32) {
    %c0_i32 = arith.constant 0 : i32
    %c0_i32_0 = arith.constant 0 : i32
    %c0_i32_1 = arith.constant 0 : i32
    return %c0_i32, %c0_i32_0 : i32, i32
  }
  func.func @transform_7(%arg0: i32) -> (i32, i32) {
    %c0_i32 = arith.constant 0 : i32
    %c0_i32_0 = arith.constant 0 : i32
    return %arg0, %c0_i32 : i32, i32
  }
}

module attributes {stable_mosaic.version = 11 : i64} {
  func.func @_conv_relu_pool_kernel(%arg0: i32, %arg1: memref<4x16x150xbf16, #tpu.memory_space<vmem>>, %arg2: memref<150x128xbf16, #tpu.memory_space<vmem>>, %arg3: memref<1x128xf32, #tpu.memory_space<vmem>>, %arg4: memref<16x128xbf16, #tpu.memory_space<vmem>>) attributes {dimension_semantics = [#tpu.dimension_semantics<parallel>], iteration_bounds = array<i64: 2>, scalar_prefetch = 0 : i64, scratch_operands = 0 : i64, tpu.core_type = #tpu.core_type<tc>, window_params = [{transform_indices = @transform_0, window_bounds = array<i64: 4, 16, 150>}, {pipeline_mode = #tpu.pipeline_mode<synchronous>, transform_indices = @transform_1, window_bounds = array<i64: 150, 128>}, {pipeline_mode = #tpu.pipeline_mode<synchronous>, transform_indices = @transform_2, window_bounds = array<i64: 1, 128>}, {transform_indices = @transform_3, window_bounds = array<i64: 16, 128>}]} {
    %c0 = arith.constant 0 : index
    %c0_0 = arith.constant 0 : index
    %c0_1 = arith.constant 0 : index
    %0 = vector.load %arg1[%c0, %c0_0, %c0_1] : memref<4x16x150xbf16, #tpu.memory_space<vmem>>, vector<4x16x150xbf16>
    %1 = vector.shape_cast %0 : vector<4x16x150xbf16> to vector<64x150xbf16>
    %c0_2 = arith.constant 0 : index
    %c0_3 = arith.constant 0 : index
    %2 = vector.load %arg2[%c0_2, %c0_3] : memref<150x128xbf16, #tpu.memory_space<vmem>>, vector<150x128xbf16>
    %cst = arith.constant dense<0.000000e+00> : vector<64x128xf32>
    %3 = tpu.matmul %1, %2, %cst {dimension_numbers = #tpu.dot_dimension_numbers<[1], [0], [0], [1], [0, 0, 1, 1], [], []>} : vector<64x150xbf16>, vector<150x128xbf16>, vector<64x128xf32> -> vector<64x128xf32>
    %4 = vector.shape_cast %3 : vector<64x128xf32> to vector<4x16x128xf32>
    %cst_4 = arith.constant dense<0xFF800000> : vector<16x128xf32>
    %5 = vector.multi_reduction <maximumf>, %4, %cst_4 [0] : vector<4x16x128xf32> to vector<16x128xf32>
    %c0_5 = arith.constant 0 : index
    %c0_6 = arith.constant 0 : index
    %6 = vector.load %arg3[%c0_5, %c0_6] : memref<1x128xf32, #tpu.memory_space<vmem>>, vector<1x128xf32>
    %7 = vector.broadcast %6 : vector<1x128xf32> to vector<16x128xf32>
    %8 = arith.addf %5, %7 : vector<16x128xf32>
    %cst_7 = arith.constant 0.000000e+00 : f32
    %9 = vector.broadcast %cst_7 : f32 to vector<16x128xf32>
    %10 = arith.maximumf %8, %9 : vector<16x128xf32>
    %11 = arith.truncf %10 : vector<16x128xf32> to vector<16x128xbf16>
    %c0_8 = arith.constant 0 : index
    %c0_9 = arith.constant 0 : index
    %12 = vector.load %arg4[%c0_8, %c0_9] : memref<16x128xbf16, #tpu.memory_space<vmem>>, vector<16x128xbf16>
    tpu.vector_store %arg4[%c0_8, %c0_9], %11 {strides = array<i32>} : memref<16x128xbf16, #tpu.memory_space<vmem>>, vector<16x128xbf16>,
    return
  }
  func.func @transform_0(%arg0: i32) -> (i32, i32, i32) {
    %c0_i32 = arith.constant 0 : i32
    %c0_i32_0 = arith.constant 0 : i32
    %c0_i32_1 = arith.constant 0 : i32
    return %c0_i32, %arg0, %c0_i32_0 : i32, i32, i32
  }
  func.func @transform_1(%arg0: i32) -> (i32, i32) {
    %c0_i32 = arith.constant 0 : i32
    %c0_i32_0 = arith.constant 0 : i32
    %c0_i32_1 = arith.constant 0 : i32
    return %c0_i32, %c0_i32_0 : i32, i32
  }
  func.func @transform_2(%arg0: i32) -> (i32, i32) {
    %c0_i32 = arith.constant 0 : i32
    %c0_i32_0 = arith.constant 0 : i32
    %c0_i32_1 = arith.constant 0 : i32
    return %c0_i32, %c0_i32_0 : i32, i32
  }
  func.func @transform_3(%arg0: i32) -> (i32, i32) {
    %c0_i32 = arith.constant 0 : i32
    %c0_i32_0 = arith.constant 0 : i32
    return %arg0, %c0_i32 : i32, i32
  }
}

</mosaic_0001>

<bundles_post_ra>
// kernel: lenet_forward.3
= control target key start
LH: loop header
LB: loop body
LE: loop exit
PB: predicated region body
PF: predicated region fallthrough
CT: control target
= control target key end

     0   :  { %s1855_s12 = smov 0   ;;  %s1857_s13 = smov 0   ;;  %s2181_s0 = inlined_call_operand.vmem [shape: bf16[4,288,25], index: 0, kind: input, shape index: {}]   ;;  %s2182_s1 = inlined_call_operand.vmem [shape: bf16[25,128], index: 1, kind: input, shape index: {}]   ;;  %s2183_s2 = inlined_call_operand.vmem [shape: f32[1,128], index: 2, kind: input, shape index: {}]   ;;  %s2184_s3 = inlined_call_operand.vmem [shape: bf16[288,128], index: 3, kind: output, shape index: {}]  }
   0x1   :  { %s1859_s14 = smov 0  }
   0x2 LB: > { %s1453_s15 = sadd.s32 4294967295, %s1832_s14   ;;  %s1872_s16 = sadd.s32 1, %s1832_s14   ;;  %s1832_s14 = sphi %s1859_s14, %s2187_s14   ;;  %s1828_s13 = sphi %s1857_s13, %s2186_s13   ;;  %s1824_s12 = sphi %s1855_s12, %s2185_s12  }
   0x3   : > { %s17_s17 = ssub.s32 %s1832_s14, %s1872_s16  ;;  %s20_s18 = sadd.s32 1, %s1828_s13 }
   0x4   : > { %p18_p0 = scmp.eq.s32.totalorder %s17_s17, 0  ;;  %p27_p1 = scmp.ne.s32.totalorder %s1828_s13, %s1824_s12 }
   0x5   : > { %p28_p2 = scmp.eq.s32.totalorder %s1832_s14, 0  ;;  %p1456_p4 = scmp.ge.s32.totalorder %s1832_s14, 2 }
   0x6   : > { %s1881_s19 = scalar_select %p18_p0, %s1828_s13, %s20_s18  }
   0x7   : > { %p29_p3 = por %p28_p2, %p27_p1  ;;  %127 = sbr.rel (%p1456_p4) target bundleno = 37 (0x25), region = 24 }
   0xe   : > { %130 = sbr.rel (!%p29_p3) target bundleno = 37 (0x25), region = 28  ;;  %s132_s20 = sand.u32 (%p29_p3), 1, %s1828_s13  }
   0xf   : > { %s1555_s21 = smul.u32 (%p29_p3), 72, %s1832_s14 }
  0x10   : > { %s1745_s22 = smul.u32 (%p29_p3), 288, %s132_s20 }
  0x11   : > { %s1889_s25 = scalar_lea.vmem (%p29_p3), %s2181_s0, %s1555_s21 }
  0x12   : > { %v153_v0 = vld [vmem:[%s1889_s25] sm:$0xff] (%p29_p3)   ;;  %v157_v1 = vld [vmem:[%s1889_s25 + $0x8] sm:$0xff] (%p29_p3)   ;;  %v161_v2 = vld [vmem:[%s1889_s25 + $0x10] sm:$0xff] (%p29_p3)   ;;  %s1894_s26 = scalar_lea.vmem (%p29_p3), [#allocation2], %s1745_s22 }
  0x13   : > { %154 = vst [vmem:[%s1894_s26] sm:$0xff] (%p29_p3), %v153_v0   ;;  %158 = vst [vmem:[%s1894_s26 + $0x8] sm:$0xff] (%p29_p3), %v157_v1   ;;  %v165_v3 = vld [vmem:[%s1889_s25 + $0x18] sm:$0xff] (%p29_p3)   ;;  %v169_v4 = vld [vmem:[%s1889_s25 + $0x20] sm:$0xff] (%p29_p3)  }
  0x14   : > { %162 = vst [vmem:[%s1894_s26 + $0x10] sm:$0xff] (%p29_p3), %v161_v2   ;;  %v173_v5 = vld [vmem:[%s1889_s25 + $0x28] sm:$0xff] (%p29_p3)   ;;  %166 = vst [vmem:[%s1894_s26 + $0x18] sm:$0xff] (%p29_p3), %v165_v3   ;;  %v177_v6 = vld [vmem:[%s1889_s25 + $0x30] sm:$0xff] (%p29_p3)  }
  0x15   : > { %170 = vst [vmem:[%s1894_s26 + $0x20] sm:$0xff] %v169_v4   ;;  %174 = vst [vmem:[%s1894_s26 + $0x28] sm:$0xff] %v173_v5   ;;  %v181_v7 = vld [vmem:[%s1889_s25 + $0x38] sm:$0xff]   ;;  %v185_v8 = vld [vmem:[%s1889_s25 + $0x40] sm:$0xff]  }
  0x16   : > { %178 = vst [vmem:[%s1894_s26 + $0x30] sm:$0xff] %v177_v6   ;;  %182 = vst [vmem:[%s1894_s26 + $0x38] sm:$0xff] %v181_v7   ;;  %v189_v9 = vld [vmem:[%s1889_s25 + $0x90] sm:$0xff]   ;;  %v193_v10 = vld [vmem:[%s1889_s25 + $0x98] sm:$0xff]  }
  0x17   : > { %186 = vst [vmem:[%s1894_s26 + $0x40] sm:$0xff] %v185_v8   ;;  %v197_v11 = vld [vmem:[%s1889_s25 + $0xa0] sm:$0xff]   ;;  %190 = vst [vmem:[%s1894_s26 + $0x48] sm:$0xff] %v189_v9   ;;  %v201_v12 = vld [vmem:[%s1889_s25 + $0xa8] sm:$0xff]  }
  0x18   : > { %194 = vst [vmem:[%s1894_s26 + $0x50] sm:$0xff] %v193_v10   ;;  %198 = vst [vmem:[%s1894_s26 + $0x58] sm:$0xff] %v197_v11   ;;  %v205_v13 = vld [vmem:[%s1889_s25 + $0xb0] sm:$0xff]   ;;  %v209_v14 = vld [vmem:[%s1889_s25 + $0xb8] sm:$0xff]  }
  0x19   : > { %202 = vst [vmem:[%s1894_s26 + $0x60] sm:$0xff] %v201_v12   ;;  %206 = vst [vmem:[%s1894_s26 + $0x68] sm:$0xff] %v205_v13   ;;  %v213_v15 = vld [vmem:[%s1889_s25 + $0xc0] sm:$0xff]   ;;  %v217_v16 = vld [vmem:[%s1889_s25 + $0xc8] sm:$0xff]  }
  0x1a   : > { %210 = vst [vmem:[%s1894_s26 + $0x70] sm:$0xff] %v209_v14   ;;  %v221_v17 = vld [vmem:[%s1889_s25 + $0xd0] sm:$0xff]   ;;  %214 = vst [vmem:[%s1894_s26 + $0x78] sm:$0xff] %v213_v15   ;;  %v225_v18 = vld [vmem:[%s1889_s25 + $0x120] sm:$0xff]  }
  0x1b   : > { %218 = vst [vmem:[%s1894_s26 + $0x80] sm:$0xff] %v217_v16   ;;  %222 = vst [vmem:[%s1894_s26 + $0x88] sm:$0xff] %v221_v17   ;;  %v229_v19 = vld [vmem:[%s1889_s25 + $0x128] sm:$0xff]   ;;  %v233_v20 = vld [vmem:[%s1889_s25 + $0x130] sm:$0xff]  }
  0x1c   : > { %226 = vst [vmem:[%s1894_s26 + $0x90] sm:$0xff] %v225_v18   ;;  %230 = vst [vmem:[%s1894_s26 + $0x98] sm:$0xff] %v229_v19   ;;  %v237_v21 = vld [vmem:[%s1889_s25 + $0x138] sm:$0xff]   ;;  %v241_v22 = vld [vmem:[%s1889_s25 + $0x140] sm:$0xff]  }
  0x1d   : > { %234 = vst [vmem:[%s1894_s26 + $0xa0] sm:$0xff] %v233_v20   ;;  %v245_v23 = vld [vmem:[%s1889_s25 + $0x148] sm:$0xff]   ;;  %238 = vst [vmem:[%s1894_s26 + $0xa8] sm:$0xff] %v237_v21   ;;  %v249_v24 = vld [vmem:[%s1889_s25 + $0x150] sm:$0xff]  }
  0x1e   : > { %242 = vst [vmem:[%s1894_s26 + $0xb0] sm:$0xff] %v241_v22   ;;  %246 = vst [vmem:[%s1894_s26 + $0xb8] sm:$0xff] %v245_v23   ;;  %v253_v25 = vld [vmem:[%s1889_s25 + $0x158] sm:$0xff]   ;;  %v257_v26 = vld [vmem:[%s1889_s25 + $0x160] sm:$0xff]  }
  0x1f   : > { %250 = vst [vmem:[%s1894_s26 + $0xc0] sm:$0xff] %v249_v24   ;;  %254 = vst [vmem:[%s1894_s26 + $0xc8] sm:$0xff] %v253_v25   ;;  %v261_v27 = vld [vmem:[%s1889_s25 + $0x1b0] sm:$0xff]   ;;  %v265_v28 = vld [vmem:[%s1889_s25 + $0x1b8] sm:$0xff]  }
  0x20   : > { %258 = vst [vmem:[%s1894_s26 + $0xd0] sm:$0xff] %v257_v26   ;;  %v269_v29 = vld [vmem:[%s1889_s25 + $0x1c0] sm:$0xff]   ;;  %262 = vst [vmem:[%s1894_s26 + $0xd8] sm:$0xff] %v261_v27   ;;  %v273_v30 = vld [vmem:[%s1889_s25 + $0x1c8] sm:$0xff]  }
  0x21   : > { %266 = vst [vmem:[%s1894_s26 + $0xe0] sm:$0xff] %v265_v28   ;;  %270 = vst [vmem:[%s1894_s26 + $0xe8] sm:$0xff] %v269_v29   ;;  %v277_v31 = vld [vmem:[%s1889_s25 + $0x1d0] sm:$0xff]   ;;  %v281_v32 = vld [vmem:[%s1889_s25 + $0x1d8] sm:$0xff]  }
  0x22   : > { %274 = vst [vmem:[%s1894_s26 + $0xf0] sm:$0xff] %v273_v30   ;;  %278 = vst [vmem:[%s1894_s26 + $0xf8] sm:$0xff] %v277_v31   ;;  %v285_v33 = vld [vmem:[%s1889_s25 + $0x1e0] sm:$0xff]   ;;  %v289_v34 = vld [vmem:[%s1889_s25 + $0x1e8] sm:$0xff]  }
  0x23   : > { %282 = vst [vmem:[%s1894_s26 + $0x100] sm:$0xff] %v281_v32   ;;  %v293_v35 = vld [vmem:[%s1889_s25 + $0x1f0] sm:$0xff]   ;;  %286 = vst [vmem:[%s1894_s26 + $0x108] sm:$0xff] %v285_v33  }
  0x24   : > { %290 = vst [vmem:[%s1894_s26 + $0x110] sm:$0xff] %v289_v34   ;;  %294 = vst [vmem:[%s1894_s26 + $0x118] sm:$0xff] %v293_v35  }
  0x25 PF: > { %p1458_p5 = scmp.ge.s32.totalorder %s1832_s14, 1  ;;  %p462_p6 = scmp.lt.s32.totalorder %s1832_s14, 3 }
  0x27   : > { %p463_p7 = pnand %p1458_p5, %p462_p6 }
  0x28   : > { %v1772_v36 = vld [vmem:[%s2182_s1] sm:$0xff] (!%p463_p7)   ;;  %vm876_vm0 = vcmask (!%p463_p7), 1043456   ;;  %v1773_v37 = vld [vmem:[%s2182_s1 + $0x8] sm:$0x1f] (!%p463_p7)   ;;  %vm877_vm1 = vcmask (!%p463_p7), 1044480   ;;  %s469_s4 = sand.u32 (!%p463_p7), 1, %s1824_s12  }
  0x29   : > { %466 = sbr.rel (%p463_p7) target bundleno = 342 (0x156), region = 69  ;;  %1665 = vmatprep.subr.bf16.mxu0 (!%p463_p7), %v1772_v36  ;;  %1741 = vmatprep.subr.bf16.mxu1 (!%p463_p7), %v1772_v36  ;;  %v1834_v38 = vmov (!%p463_p7), 65535   ;;  %vm767_vm2 = vcmask (!%p463_p7), 203776  }
  0x2a   : > { %1666 = vmatpush3.bf16.msra.mxu0 (!%p463_p7), %v1772_v36  ;;  %1743 = vmatpush3.bf16.msra.mxu1 (!%p463_p7), %v1772_v36  ;;  %v878_v39 = vsel (!%p463_p7), %vm876_vm0, 4294967295, %v1834_v38  ;;  %s1746_s5 = smul.u32 (!%p463_p7), 288, %s469_s4 }
  0x2b   : > { %v879_v40 = vsel (!%p463_p7), %vm877_vm1, %v878_v39, 0  ;;  %s493_s7 = smul.u32 (!%p463_p7), 18, %s1453_s15 }
  0x2c   : > { %v881_v41 = vand.u32 (!%p463_p7), %v1773_v37, %v879_v40  ;;  %s1974_s6 = scalar_lea.vmem (!%p463_p7), [#allocation2], %s1746_s5 }
  0x2d   : > { %v1774_v42 = vld [vmem:[%s1974_s6] sm:$0xff] (!%p463_p7)   ;;  %v1775_v43 = vld [vmem:[%s1974_s6 + $0x8] sm:$0xff] (!%p463_p7)   ;;  %v1776_v44 = vld [vmem:[%s1974_s6 + $0x90] sm:$0xff] (!%p463_p7)   ;;  %p494_p8 = scmp.lt.s32.totalorder (!%p463_p7), %s493_s7, 35 }
  0x2e   : > { %1667 = vmatprep.subr.bf16.mxu0 (!%p463_p7), %v881_v41  ;;  %1742 = vmatprep.subr.bf16.mxu1 (!%p463_p7), %v881_v41  ;;  %v1777_v45 = vld [vmem:[%s1974_s6 + $0x98] sm:$0xff] (!%p463_p7)   ;;  %v1778_v46 = vld [vmem:[%s1974_s6 + $0x10] sm:$0xff] (!%p463_p7)   ;;  %v1780_v47 = vld [vmem:[%s1974_s6 + $0xa0] sm:$0xff] (!%p463_p7)  }
  0x2f   : > { %1668 = vmatpush3.bf16.msra.mxu0 (!%p463_p7), %v881_v41  ;;  %1744 = vmatpush3.bf16.msra.mxu1 (!%p463_p7), %v881_v41  ;;  %v1779_v48 = vld [vmem:[%s1974_s6 + $0x18] sm:$0xff] (!%p463_p7)   ;;  %v1781_v49 = vld [vmem:[%s1974_s6 + $0xa8] sm:$0xff] (!%p463_p7)   ;;  %v1782_v50 = vld [vmem:[%s1974_s6 + $0x20] sm:$0xff] (!%p463_p7)  }
  0x30   : > { %1669 = vmatprep.mubr.msk.bf16.mxu0 %vm767_vm2, %v1774_v42  ;;  %1705 = vmatprep.mubr.msk.bf16.mxu1 %vm767_vm2, %v1776_v44  ;;  %v1784_v51 = vld [vmem:[%s1974_s6 + $0xb0] sm:$0xff]   ;;  %v1783_v52 = vld [vmem:[%s1974_s6 + $0x28] sm:$0xff]   ;;  %v1785_v53 = vld [vmem:[%s1974_s6 + $0xb8] sm:$0xff]   ;;  %s2189_s7 = smov (!%p494_p8, %s493_s7), 35 }
  0x31   : > { %v1786_v54 = vld [vmem:[%s1974_s6 + $0x30] sm:$0xff]   ;;  %v1788_v55 = vld [vmem:[%s1974_s6 + $0xc0] sm:$0xff]   ;;  %v1787_v56 = vld [vmem:[%s1974_s6 + $0x38] sm:$0xff]   ;;  %s1459_s10 = sshll.u32 %s2189_s7, 2 }
  0x32   : > { %1670 = vmatmul.mubr.msk.bf16.vlgmr.msra.gmra.mrb[0].mxu0 %vm767_vm2, %v1775_v43  ;;  %1706 = vmatmul.mubr.msk.bf16.vlgmr.msra.gmra.mrb[0].mxu1 %vm767_vm2, %v1777_v45  ;;  %v1789_v57 = vld [vmem:[%s1974_s6 + $0xc8] sm:$0xff]   ;;  %v1790_v58 = vld [vmem:[%s1974_s6 + $0x40] sm:$0xff]   ;;  %v1792_v59 = vld [vmem:[%s1974_s6 + $0xd0] sm:$0xff]   ;;  %s2117_s14 = scalar_lea.vmem %s2184_s3, %s1459_s10 }
  0x33   : > { %1673 = vmatprep.mubr.msk.bf16.mxu0 %vm767_vm2, %v1778_v46  ;;  %1709 = vmatprep.mubr.msk.bf16.mxu1 %vm767_vm2, %v1780_v47  ;;  %v1791_v60 = vld [vmem:[%s1974_s6 + $0x48] sm:$0xff]   ;;  %v1793_v61 = vld [vmem:[%s1974_s6 + $0xd8] sm:$0xff]   ;;  %v1794_v62 = vld [vmem:[%s1974_s6 + $0x50] sm:$0xff]  }
  0x34   : > { %v1796_v63 = vld [vmem:[%s1974_s6 + $0xe0] sm:$0xff]   ;;  %v1795_v0 = vld [vmem:[%s1974_s6 + $0x58] sm:$0xff]   ;;  %v1797_v1 = vld [vmem:[%s1974_s6 + $0xe8] sm:$0xff]  }
  0x35   : > { %v1798_v2 = vld [vmem:[%s1974_s6 + $0x60] sm:$0xff]   ;;  %v1800_v3 = vld [vmem:[%s1974_s6 + $0xf0] sm:$0xff]   ;;  %v1799_v4 = vld [vmem:[%s1974_s6 + $0x68] sm:$0xff]  }
  0x36   : > { %v1801_v5 = vld [vmem:[%s1974_s6 + $0xf8] sm:$0xff]   ;;  %v1802_v6 = vld [vmem:[%s1974_s6 + $0x70] sm:$0xff]   ;;  %v1804_v7 = vld [vmem:[%s1974_s6 + $0x100] sm:$0xff]  }
  0x37   : > { %v1803_v8 = vld [vmem:[%s1974_s6 + $0x78] sm:$0xff]   ;;  %v1805_v9 = vld [vmem:[%s1974_s6 + $0x108] sm:$0xff]   ;;  %v1806_v10 = vld [vmem:[%s1974_s6 + $0x80] sm:$0xff]  }
  0x38   : > { %v1808_v11 = vld [vmem:[%s1974_s6 + $0x110] sm:$0xff]   ;;  %v1807_v12 = vld [vmem:[%s1974_s6 + $0x88] sm:$0xff]   ;;  %v1809_v13 = vld [vmem:[%s1974_s6 + $0x118] sm:$0xff]  }
  0x3a   : > { %1674 = vmatmul.mubr.msk.bf16.gmra.mrb[4].mxu0 %vm767_vm2, %v1779_v48  ;;  %1710 = vmatmul.mubr.msk.bf16.gmra.mrb[4].mxu1 %vm767_vm2, %v1781_v49 }
  0x3b   : > { %1677 = vmatprep.mubr.msk.bf16.mxu0 %vm767_vm2, %v1782_v50  ;;  %1713 = vmatprep.mubr.msk.bf16.mxu1 %vm767_vm2, %v1784_v51 }
  0x42   : > { %1678 = vmatmul.mubr.msk.bf16.gmra.mrb[8].mxu0 %vm767_vm2, %v1783_v52  ;;  %1714 = vmatmul.mubr.msk.bf16.gmra.mrb[8].mxu1 %vm767_vm2, %v1785_v53 }
  0x43   : > { %1681 = vmatprep.mubr.msk.bf16.mxu0 %vm767_vm2, %v1786_v54  ;;  %1717 = vmatprep.mubr.msk.bf16.mxu1 %vm767_vm2, %v1788_v55 }
  0x4a   : > { %1682 = vmatmul.mubr.msk.bf16.gmra.mrb[12].mxu0 %vm767_vm2, %v1787_v56  ;;  %1718 = vmatmul.mubr.msk.bf16.gmra.mrb[12].mxu1 %vm767_vm2, %v1789_v57  ;;  %v2109_v57 = vld [vmem:[%s2183_s2] ss:$0 sm:$0xff] }
  0x4b   : > { %1685 = vmatprep.mubr.msk.bf16.mxu0 %vm767_vm2, %v1790_v58  ;;  %1721 = vmatprep.mubr.msk.bf16.mxu1 %vm767_vm2, %v1792_v59 }
  0x52   : > { %1686 = vmatmul.mubr.msk.bf16.gmra.mrb[16].mxu0 %vm767_vm2, %v1791_v60  ;;  %1722 = vmatmul.mubr.msk.bf16.gmra.mrb[16].mxu1 %vm767_vm2, %v1793_v61 }
  0x53   : > { %1689 = vmatprep.mubr.msk.bf16.mxu0 %vm767_vm2, %v1794_v62  ;;  %1725 = vmatprep.mubr.msk.bf16.mxu1 %vm767_vm2, %v1796_v63 }
  0x5a   : > { %1690 = vmatmul.mubr.msk.bf16.gmra.mrb[20].mxu0 %vm767_vm2, %v1795_v0  ;;  %1726 = vmatmul.mubr.msk.bf16.gmra.mrb[20].mxu1 %vm767_vm2, %v1797_v1 }
  0x5b   : > { %1693 = vmatprep.mubr.msk.bf16.mxu0 %vm767_vm2, %v1798_v2  ;;  %1729 = vmatprep.mubr.msk.bf16.mxu1 %vm767_vm2, %v1800_v3 }
  0x62   : > { %1694 = vmatmul.mubr.msk.bf16.gmra.mrb[24].mxu0 %vm767_vm2, %v1799_v4  ;;  %1730 = vmatmul.mubr.msk.bf16.gmra.mrb[24].mxu1 %vm767_vm2, %v1801_v5 }
  0x63   : > { %1697 = vmatprep.mubr.msk.bf16.mxu0 %vm767_vm2, %v1802_v6  ;;  %1733 = vmatprep.mubr.msk.bf16.mxu1 %vm767_vm2, %v1804_v7 }
  0x6a   : > { %1698 = vmatmul.mubr.msk.bf16.gmra.mrb[28].mxu0 %vm767_vm2, %v1803_v8  ;;  %1734 = vmatmul.mubr.msk.bf16.gmra.mrb[28].mxu1 %vm767_vm2, %v1805_v9 }
  0x6b   : > { %1701 = vmatprep.mubr.msk.bf16.mxu0 %vm767_vm2, %v1806_v10  ;;  %1737 = vmatprep.mubr.msk.bf16.mxu1 %vm767_vm2, %v1808_v11 }
  0x72   : > { %1702 = vmatmul.mubr.msk.bf16.gmra.mrb[32].mxu0 %vm767_vm2, %v1807_v12  ;;  %1738 = vmatmul.mubr.msk.bf16.gmra.mrb[32].mxu1 %vm767_vm2, %v1809_v13 }
 0x105   : > { %v2048_v14 = vpop.f32.mrb[0].mxu0  ;;  %v2050_v15 = vpop.f32.mrb[0].mxu1 }
 0x106   : > { %v917_v16 = vpop.f32.mrb[1].mxu0  ;;  %v1061_v17 = vpop.f32.mrb[1].mxu1 }
 0x107   : > { %v2052_v18 = vpop.f32.mrb[2].mxu0  ;;  %v2054_v19 = vpop.f32.mrb[2].mxu1 }
 0x108   : > { %v920_v20 = vpop.f32.mrb[3].mxu0  ;;  %v1064_v21 = vpop.f32.mrb[3].mxu1 }
 0x10d   : > { %v2056_v22 = vpop.f32.mrb[4].mxu0  ;;  %v2058_v23 = vpop.f32.mrb[4].mxu1 }
 0x10e   : > { %v933_v24 = vpop.f32.mrb[5].mxu0  ;;  %v1077_v25 = vpop.f32.mrb[5].mxu1 }
 0x10f   : > { %v2060_v26 = vpop.f32.mrb[6].mxu0  ;;  %v2062_v27 = vpop.f32.mrb[6].mxu1 }
 0x110   : > { %v936_v28 = vpop.f32.mrb[7].mxu0  ;;  %v1080_v29 = vpop.f32.mrb[7].mxu1 }
 0x115   : > { %v2064_v30 = vpop.f32.mrb[8].mxu0  ;;  %v2066_v31 = vpop.f32.mrb[8].mxu1 }
 0x116   : > { %v2068_v32 = vpop.f32.mrb[9].mxu0  ;;  %v2070_v33 = vpop.f32.mrb[9].mxu1 }
 0x117   : > { %v2072_v34 = vpop.f32.mrb[10].mxu0  ;;  %v2074_v35 = vpop.f32.mrb[10].mxu1 }
 0x118   : > { %v2076_v36 = vpop.f32.mrb[11].mxu0  ;;  %v2078_v37 = vpop.f32.mrb[11].mxu1 }
 0x11d   : > { %v2080_v38 = vpop.f32.mrb[12].mxu0  ;;  %v2082_v39 = vpop.f32.mrb[12].mxu1 }
 0x11e   : > { %v2084_v40 = vpop.f32.mrb[13].mxu0  ;;  %v2086_v41 = vpop.f32.mrb[13].mxu1 }
 0x11f   : > { %v2088_v42 = vpop.f32.mrb[14].mxu0  ;;  %v2090_v43 = vpop.f32.mrb[14].mxu1 }
 0x120   : > { %v2092_v44 = vpop.f32.mrb[15].mxu0  ;;  %v2094_v45 = vpop.f32.mrb[15].mxu1 }
 0x125   : > { %v1687_v46 = vpop.f32.mrb[16].mxu0  ;;  %v1723_v47 = vpop.f32.mrb[16].mxu1 }
 0x126   : > { %v1204_v48 = vmax.f32 %v917_v16, %v1687_v46  ;;  %v2098_v49 = vpop.f32.mrb[17].mxu0  ;;  %v2100_v50 = vpop.f32.mrb[17].mxu1 }
 0x127   : > { %v1688_v51 = vpop.f32.mrb[18].mxu0  ;;  %v1724_v52 = vpop.f32.mrb[18].mxu1 }
 0x128   : > { %v1205_v53 = vmax.f32 %v1204_v48, %v1061_v17  ;;  %v1207_v54 = vmax.f32 %v920_v20, %v1688_v51  ;;  %v2102_v55 = vpop.f32.mrb[19].mxu0  ;;  %v2104_v56 = vpop.f32.mrb[19].mxu1 }
 0x12a   : > { %v1206_v58 = vmax.f32 %v1205_v53, %v1723_v47  ;;  %v1208_v59 = vmax.f32 %v1207_v54, %v1064_v21 }
 0x12c   : > { %v1265_v60 = vadd.f32 %v2109_v57, %v1206_v58  ;;  %v1209_v61 = vmax.f32 %v1208_v59, %v1724_v52 }
 0x12d   : > { %v1691_v62 = vpop.f32.mrb[20].mxu0  ;;  %v1727_v63 = vpop.f32.mrb[20].mxu1 }
 0x12e   : > { %v1266_v0 = vadd.f32 %v2109_v57, %v1209_v61  ;;  %v1216_v1 = vmax.f32 %v933_v24, %v1691_v62  ;;  %v997_v2 = vpop.f32.mrb[21].mxu0  ;;  %v1141_v3 = vpop.f32.mrb[21].mxu1  ;;  %v1283_v7 = vmax.f32 %v1265_v60, 0.0 }
 0x12f   : > { %v1210_v4 = vmax.f32 %v2048_v14, %v997_v2  ;;  %v1692_v5 = vpop.f32.mrb[22].mxu0  ;;  %v1728_v6 = vpop.f32.mrb[22].mxu1 }
 0x130   : > { %v1284_v8 = vmax.f32 %v1266_v0, 0.0  ;;  %v1217_v9 = vmax.f32 %v1216_v1, %v1077_v25  ;;  %v1219_v10 = vmax.f32 %v936_v28, %v1692_v5  ;;  %v1000_v11 = vpop.f32.mrb[23].mxu0  ;;  %v1144_v12 = vpop.f32.mrb[23].mxu1 }
 0x131   : > { %v1211_v13 = vmax.f32 %v1210_v4, %v2050_v15  ;;  %v1213_v16 = vmax.f32 %v2052_v18, %v1000_v11 }
 0x132   : > { %v1577_v17 = vpack.c.bf16 %v1284_v8, %v1283_v7  ;;  %v1218_v14 = vmax.f32 %v1217_v9, %v1727_v63  ;;  %v1220_v20 = vmax.f32 %v1219_v10, %v1080_v29 }
 0x133   : > { %v1212_v21 = vmax.f32 %v1211_v13, %v1141_v3  ;;  %v1214_v24 = vmax.f32 %v1213_v16, %v2054_v19 }
 0x134   : > { %1578 = vst [vmem:[%s2117_s14] sm:$0xff] %v1577_v17   ;;  %v1269_v25 = vadd.f32 %v2109_v57, %v1218_v14  ;;  %v1221_v28 = vmax.f32 %v1220_v20, %v1728_v6 }
 0x135   : > { %v1267_v46 = vadd.f32 %v2109_v57, %v1212_v21  ;;  %v1215_v47 = vmax.f32 %v1214_v24, %v1144_v12  ;;  %v1695_v48 = vpop.f32.mrb[24].mxu0  ;;  %v1731_v51 = vpop.f32.mrb[24].mxu1 }
 0x136   : > { %v1270_v52 = vadd.f32 %v2109_v57, %v1221_v28  ;;  %v1228_v15 = vmax.f32 %v2068_v32, %v1695_v48  ;;  %v1013_v18 = vpop.f32.mrb[25].mxu0  ;;  %v1157_v53 = vpop.f32.mrb[25].mxu1  ;;  %v1287_v59 = vmax.f32 %v1269_v25, 0.0 }
 0x137   : > { %v1268_v29 = vadd.f32 %v2109_v57, %v1215_v47  ;;  %v1222_v54 = vmax.f32 %v2056_v22, %v1013_v18  ;;  %v1696_v19 = vpop.f32.mrb[26].mxu0  ;;  %v1732_v58 = vpop.f32.mrb[26].mxu1  ;;  %v1285_v1 = vmax.f32 %v1267_v46, 0.0 }
 0x138   : > { %v1288_v60 = vmax.f32 %v1270_v52, 0.0  ;;  %v1229_v61 = vmax.f32 %v1228_v15, %v2070_v33  ;;  %v1231_v62 = vmax.f32 %v2076_v36, %v1696_v19  ;;  %v1016_v63 = vpop.f32.mrb[27].mxu0  ;;  %v1160_v0 = vpop.f32.mrb[27].mxu1 }
 0x139   : > { %v1286_v32 = vmax.f32 %v1268_v29, 0.0  ;;  %v1223_v2 = vmax.f32 %v1222_v54, %v2058_v23  ;;  %v1225_v3 = vmax.f32 %v2060_v26, %v1016_v63 }
 0x13a   : > { %v1587_v4 = vpack.c.bf16 %v1288_v60, %v1287_v59  ;;  %v1230_v22 = vmax.f32 %v1229_v61, %v1731_v51  ;;  %v1232_v5 = vmax.f32 %v1231_v62, %v2078_v37 }
 0x13b   : > { %v1582_v6 = vpack.c.bf16 %v1286_v32, %v1285_v1  ;;  %v1224_v7 = vmax.f32 %v1223_v2, %v1157_v53  ;;  %v1226_v8 = vmax.f32 %v1225_v3, %v2062_v27 }
 0x13c   : > { %1620 = vst [vmem:[%s2117_s14 + $0x10] sm:$0xff] %v1587_v4   ;;  %v1273_v33 = vadd.f32 %v2109_v57, %v1230_v22  ;;  %v1233_v36 = vmax.f32 %v1232_v5, %v1732_v58 }
 0x13d   : > { %1619 = vst [vmem:[%s2117_s14 + $0x8] sm:$0xff] %v1582_v6   ;;  %v1271_v9 = vadd.f32 %v2109_v57, %v1224_v7  ;;  %v1227_v10 = vmax.f32 %v1226_v8, %v1160_v0  ;;  %v1699_v11 = vpop.f32.mrb[28].mxu0  ;;  %v1735_v23 = vpop.f32.mrb[28].mxu1 }
 0x13e   : > { %v1274_v26 = vadd.f32 %v2109_v57, %v1233_v36  ;;  %v1240_v12 = vmax.f32 %v2084_v40, %v1699_v11  ;;  %v1029_v13 = vpop.f32.mrb[29].mxu0  ;;  %v1173_v37 = vpop.f32.mrb[29].mxu1  ;;  %v1291_v20 = vmax.f32 %v1273_v33, 0.0 }
 0x13f   : > { %v1272_v16 = vadd.f32 %v2109_v57, %v1227_v10  ;;  %v1234_v27 = vmax.f32 %v2064_v30, %v1029_v13  ;;  %v1700_v17 = vpop.f32.mrb[30].mxu0  ;;  %v1736_v14 = vpop.f32.mrb[30].mxu1  ;;  %v1289_v47 = vmax.f32 %v1271_v9, 0.0 }
 0x140   : > { %v1292_v21 = vmax.f32 %v1274_v26, 0.0  ;;  %v1241_v24 = vmax.f32 %v1240_v12, %v2086_v41  ;;  %v1243_v25 = vmax.f32 %v2092_v44, %v1700_v17  ;;  %v1032_v28 = vpop.f32.mrb[31].mxu0  ;;  %v1176_v46 = vpop.f32.mrb[31].mxu1 }
 0x141   : > { %v1290_v40 = vmax.f32 %v1272_v16, 0.0  ;;  %v1235_v48 = vmax.f32 %v1234_v27, %v2066_v31  ;;  %v1237_v51 = vmax.f32 %v2072_v34, %v1032_v28 }
 0x142   : > { %v1597_v52 = vpack.c.bf16 %v1292_v21, %v1291_v20  ;;  %v1242_v30 = vmax.f32 %v1241_v24, %v1735_v23  ;;  %v1244_v15 = vmax.f32 %v1243_v25, %v2094_v45 }
 0x143   : > { %v1592_v18 = vpack.c.bf16 %v1290_v40, %v1289_v47  ;;  %v1236_v53 = vmax.f32 %v1235_v48, %v1173_v37  ;;  %v1238_v29 = vmax.f32 %v1237_v51, %v2074_v35 }
 0x144   : > { %1622 = vst [vmem:[%s2117_s14 + $0x20] sm:$0xff] %v1597_v52   ;;  %v1277_v41 = vadd.f32 %v2109_v57, %v1242_v30  ;;  %v1245_v44 = vmax.f32 %v1244_v15, %v1736_v14 }
 0x145   : > { %1621 = vst [vmem:[%s2117_s14 + $0x18] sm:$0xff] %v1592_v18   ;;  %v1275_v54 = vadd.f32 %v2109_v57, %v1236_v53  ;;  %v1239_v19 = vmax.f32 %v1238_v29, %v1176_v46  ;;  %v1703_v58 = vpop.f32.mrb[32].mxu0  ;;  %v1739_v31 = vpop.f32.mrb[32].mxu1 }
 0x146   : > { %v1278_v34 = vadd.f32 %v2109_v57, %v1245_v44  ;;  %v1252_v59 = vmax.f32 %v2098_v49, %v1703_v58  ;;  %v1045_v60 = vpop.f32.mrb[33].mxu0  ;;  %v1189_v45 = vpop.f32.mrb[33].mxu1  ;;  %v1295_v0 = vmax.f32 %v1277_v41, 0.0 }
 0x147   : > { %v1276_v61 = vadd.f32 %v2109_v57, %v1239_v19  ;;  %v1246_v35 = vmax.f32 %v2080_v38, %v1045_v60  ;;  %v1704_v62 = vpop.f32.mrb[34].mxu0  ;;  %v1740_v63 = vpop.f32.mrb[34].mxu1  ;;  %v1293_v22 = vmax.f32 %v1275_v54, 0.0 }
 0x148   : > { %v1296_v1 = vmax.f32 %v1278_v34, 0.0  ;;  %v1253_v32 = vmax.f32 %v1252_v59, %v2100_v50  ;;  %v1255_v2 = vmax.f32 %v2102_v55, %v1704_v62  ;;  %v1048_v3 = vpop.f32.mrb[35].mxu0  ;;  %v1192_v4 = vpop.f32.mrb[35].mxu1 }
 0x149   : > { %v1294_v49 = vmax.f32 %v1276_v61, 0.0  ;;  %v1247_v5 = vmax.f32 %v1246_v35, %v2082_v39  ;;  %v1249_v6 = vmax.f32 %v2088_v42, %v1048_v3 }
 0x14a   : > { %v1607_v7 = vpack.c.bf16 %v1296_v1, %v1295_v0  ;;  %v1254_v38 = vmax.f32 %v1253_v32, %v1739_v31  ;;  %v1256_v8 = vmax.f32 %v1255_v2, %v2104_v56 }
 0x14b   : > { %v1602_v33 = vpack.c.bf16 %v1294_v49, %v1293_v22  ;;  %v1248_v36 = vmax.f32 %v1247_v5, %v1189_v45  ;;  %v1250_v50 = vmax.f32 %v1249_v6, %v2090_v43 }
 0x14c   : > { %1624 = vst [vmem:[%s2117_s14 + $0x30] sm:$0xff] %v1607_v7   ;;  %v1281_v55 = vadd.f32 %v2109_v57, %v1254_v38  ;;  %v1257_v9 = vmax.f32 %v1256_v8, %v1740_v63 }
 0x14d   : > { %1623 = vst [vmem:[%s2117_s14 + $0x28] sm:$0xff] %v1602_v33   ;;  %v1279_v10 = vadd.f32 %v2109_v57, %v1248_v36  ;;  %v1251_v39 = vmax.f32 %v1250_v50, %v1192_v4 }
 0x14e   : > { %v1282_v42 = vadd.f32 %v2109_v57, %v1257_v9  ;;  %v1299_v23 = vmax.f32 %v1281_v55, 0.0 }
 0x14f   : > { %v1280_v11 = vadd.f32 %v2109_v57, %v1251_v39  ;;  %v1297_v26 = vmax.f32 %v1279_v10, 0.0 }
 0x150   : > { %v1300_v56 = vmax.f32 %v1282_v42, 0.0 }
 0x151   : > { %v1298_v12 = vmax.f32 %v1280_v11, 0.0 }
 0x152   : > { %v1617_v13 = vpack.c.bf16 %v1300_v56, %v1299_v23 }
 0x153   : > { %v1612_v37 = vpack.c.bf16 %v1298_v12, %v1297_v26 }
 0x154   : > { %1626 = vst [vmem:[%s2117_s14 + $0x40] sm:$0xff] %v1617_v13  }
 0x155   : > { %1625 = vst [vmem:[%s2117_s14 + $0x38] sm:$0xff] %v1612_v37  }
 0x156 PF: > { %p10_p9 = scmp.ge.s32.totalorder %s1872_s16, 4   ;;  %s2185_s12 = smov %s1828_s13 }
 0x157   : > { %s2186_s13 = smov %s1881_s19  ;;  %s2187_s14 = smov %s1872_s16 }
 0x158   :  { %12 = sbr.rel (!%p10_p9) target bundleno = 2 (0x2), region = 108 }

// kernel: lenet_forward.4
= control target key start
LH: loop header
LB: loop body
LE: loop exit
PB: predicated region body
PF: predicated region fallthrough
CT: control target
= control target key end

     0   :  { %s689_s12 = smov 0   ;;  %s691_s13 = smov 0   ;;  %s788_s0 = inlined_call_operand.vmem [shape: bf16[4,32,150], index: 0, kind: input, shape index: {}]   ;;  %s789_s1 = inlined_call_operand.vmem [shape: bf16[150,128], index: 1, kind: input, shape index: {}]   ;;  %s790_s2 = inlined_call_operand.vmem [shape: f32[1,128], index: 2, kind: input, shape index: {}]   ;;  %s791_s3 = inlined_call_operand.vmem [shape: bf16[32,128], index: 3, kind: output, shape index: {}]  }
   0x1   :  { %s693_s14 = smov 0  }
   0x2 LB: > { %s529_s15 = sadd.s32 4294967295, %s666_s14   ;;  %s706_s16 = sadd.s32 1, %s666_s14   ;;  %s666_s14 = sphi %s693_s14, %s794_s14   ;;  %s662_s13 = sphi %s691_s13, %s793_s13   ;;  %s658_s12 = sphi %s689_s12, %s792_s12  }
   0x3   : > { %s17_s17 = ssub.s32 %s666_s14, %s706_s16  ;;  %s20_s18 = sadd.s32 1, %s662_s13 }
   0x4   : > { %p18_p0 = scmp.eq.s32.totalorder %s17_s17, 0  ;;  %p27_p1 = scmp.ne.s32.totalorder %s662_s13, %s658_s12 }
   0x5   : > { %p28_p2 = scmp.eq.s32.totalorder %s666_s14, 0  ;;  %p532_p4 = scmp.ge.s32.totalorder %s666_s14, 2 }
   0x6   : > { %s715_s19 = scalar_select %p18_p0, %s662_s13, %s20_s18  }
   0x7   : > { %p29_p3 = por %p28_p2, %p27_p1  ;;  %127 = sbr.rel (%p532_p4) target bundleno = 22 (0x16), region = 24 }
   0xe   : > { %130 = sbr.rel (!%p29_p3) target bundleno = 22 (0x16), region = 28  ;;  %s132_s20 = sand.u32 (%p29_p3), 1, %s662_s13  }
   0xf   : > { %s569_s21 = sshll.u32 (%p29_p3), %s666_s14, 4  ;;  %s533_s22 = sshll.u32 (%p29_p3), %s132_s20, 6 }
  0x10   : > { %s138_s25 = scalar_lea.vmem (%p29_p3), %s788_s0, %s569_s21  ;;  %s134_s26 = scalar_lea.vmem (%p29_p3), [#allocation2], %s533_s22 }
  0x11   : > { %v180_v0 = vld [vmem:[%s138_s25] sm:$0xff] (%p29_p3)  ;;  %v182_v1 = vld [vmem:[%s138_s25 + $0x8] sm:$0xff] (%p29_p3) }
  0x12   : > { %v184_v2 = vld [vmem:[%s138_s25 + $0x20] sm:$0xff] (%p29_p3)  ;;  %181 = vst [vmem:[%s134_s26] sm:$0xff] (%p29_p3), %v180_v0  ;;  %183 = vst [vmem:[%s134_s26 + $0x8] sm:$0xff] (%p29_p3), %v182_v1  ;;  %v186_v3 = vld [vmem:[%s138_s25 + $0x28] sm:$0xff] (%p29_p3) }
  0x13   : > { %185 = vst [vmem:[%s134_s26 + $0x10] sm:$0xff] (%p29_p3), %v184_v2  ;;  %v188_v4 = vld [vmem:[%s138_s25 + $0x40] sm:$0xff] (%p29_p3)  ;;  %v190_v5 = vld [vmem:[%s138_s25 + $0x48] sm:$0xff] (%p29_p3)  ;;  %187 = vst [vmem:[%s134_s26 + $0x18] sm:$0xff] (%p29_p3), %v186_v3 }
  0x14   : > { %189 = vst [vmem:[%s134_s26 + $0x20] sm:$0xff] (%p29_p3), %v188_v4  ;;  %191 = vst [vmem:[%s134_s26 + $0x28] sm:$0xff] (%p29_p3), %v190_v5  ;;  %v192_v6 = vld [vmem:[%s138_s25 + $0x60] sm:$0xff] (%p29_p3)  ;;  %v194_v7 = vld [vmem:[%s138_s25 + $0x68] sm:$0xff] (%p29_p3) }
  0x15   : > { %193 = vst [vmem:[%s134_s26 + $0x30] sm:$0xff] %v192_v6  ;;  %195 = vst [vmem:[%s134_s26 + $0x38] sm:$0xff] %v194_v7 }
  0x16 PF: > { %p537_p5 = scmp.ge.s32.totalorder %s666_s14, 1  ;;  %p200_p6 = scmp.lt.s32.totalorder %s666_s14, 3 }
  0x18   : > { %p201_p7 = pnand %p537_p5, %p200_p6 }
  0x19   : > { %v622_v8 = vld [vmem:[%s789_s1] sm:$0xff] (!%p201_p7)   ;;  %v668_v9 = vmov (!%p201_p7), 0   ;;  %v623_v10 = vld [vmem:[%s789_s1 + $0x8] sm:$0xff] (!%p201_p7)   ;;  %s207_s4 = sand.u32 (!%p201_p7), 1, %s658_s12   ;;  %v624_v11 = vld [vmem:[%s789_s1 + $0x10] sm:$0xff] (!%p201_p7)   ;;  %vm358_vm0 = vcmask (!%p201_p7), 179200  }
  0x1a   : > { %204 = sbr.rel (%p201_p7) target bundleno = 299 (0x12b), region = 66  ;;  %375 = vmatprep.subr.bf16.mxu0 (!%p201_p7), %v668_v9  ;;  %577 = vmatprep.subr.bf16.mxu1 (!%p201_p7), %v668_v9  ;;  %s538_s5 = sshll.u32 (!%p201_p7), %s207_s4, 6  ;;  %v625_v12 = vld [vmem:[%s789_s1 + $0x18] sm:$0xff] (!%p201_p7)   ;;  %v626_v15 = vld [vmem:[%s789_s1 + $0x20] sm:$0xff] (!%p201_p7)   ;;  %v627_v16 = vld [vmem:[%s789_s1 + $0x28] sm:$0xff] (!%p201_p7)   ;;  %vm371_vm1 = vcmask (!%p201_p7), 1042432  }
  0x1b   : > { %376 = vmatpush1.bf16.msra.mxu0 (!%p201_p7), %v622_v8  ;;  %587 = vmatpush1.bf16.msra.mxu1 (!%p201_p7), %v622_v8  ;;  %s735_s8 = scalar_lea.vmem (!%p201_p7), [#allocation2], %s538_s5  ;;  %v628_v17 = vld [vmem:[%s789_s1 + $0x30] sm:$0xff] (!%p201_p7)   ;;  %v629_v18 = vld [vmem:[%s789_s1 + $0x38] sm:$0xff] (!%p201_p7)   ;;  %v630_v19 = vld [vmem:[%s789_s1 + $0x40] sm:$0xff] (!%p201_p7)   ;;  %s539_s28 = sshll.u32 (!%p201_p7), %s529_s15, 1 }
  0x1c   : > { %377 = vmatprep.subr.bf16.mxu0 (!%p201_p7), %v668_v9  ;;  %578 = vmatprep.subr.bf16.mxu1 (!%p201_p7), %v668_v9  ;;  %v634_v13 = vld [vmem:[%s735_s8 + $0x4] ss:$8 sps:$4 sm:$0xff] (!%p201_p7)   ;;  %v631_v20 = vld [vmem:[%s789_s1 + $0x48] ss:$0 sps:$4 sm:$0x77] (!%p201_p7)   ;;  %p232_p8 = scmp.lt.s32.totalorder (!%p201_p7), %s539_s28, 3 }
  0x1d   : > { %559 = vmatprep.mubr.msk.bf16.mxu0 (!%p201_p7), %vm358_vm0, %v634_v13  ;;  %v637_v14 = vld [vmem:[%s735_s8 + $0x24] ss:$8 sps:$4 sm:$0xff] (!%p201_p7)   ;;  %v373_v21 = vsel (!%p201_p7), %vm371_vm1, %v631_v20, 0  ;;  %v632_v22 = vld [vmem:[%s735_s8] ss:$8 sps:$4 sm:$0xff] (!%p201_p7)  }
  0x1e   : > { %561 = vmatprep.mubr.msk.bf16.mxu1 (!%p201_p7), %vm358_vm0, %v637_v14  ;;  %v635_v23 = vld [vmem:[%s735_s8 + $0x20] ss:$8 sps:$4 sm:$0xff] (!%p201_p7)   ;;  %v638_v24 = vld [vmem:[%s735_s8 + $0x14] ss:$8 sps:$4 sm:$0xff] (!%p201_p7)   ;;  %v642_v26 = vld [vmem:[%s735_s8 + $0x10] ss:$8 sps:$4 sm:$0xff] (!%p201_p7)  }
  0x1f   : > { %378 = vmatpush1.bf16.msra.mxu0 (!%p201_p7), %v623_v10  ;;  %588 = vmatpush1.bf16.msra.mxu1 (!%p201_p7), %v623_v10  ;;  %v640_v25 = vld [vmem:[%s735_s8 + $0x34] ss:$8 sps:$4 sm:$0xff] (!%p201_p7)   ;;  %v643_v27 = vld [vmem:[%s735_s8 + $0x30] ss:$8 sps:$4 sm:$0xff] (!%p201_p7)   ;;  %v563_v43 = vld [vmem:[%s790_s2] ss:$0 sm:$0xff] (!%p201_p7) }
  0x20   : > { %379 = vmatprep.subr.bf16.mxu0 (!%p201_p7), %v668_v9  ;;  %579 = vmatprep.subr.bf16.mxu1 (!%p201_p7), %v668_v9 }
  0x21   : > { %s796_s28 = smov (!%p232_p8, %s539_s28), 3 }
  0x22   : > { %s540_s14 = sshll.u32 %s796_s28, 2 }
  0x23   : > { %380 = vmatpush1.bf16.msra.mxu0 %v624_v11  ;;  %589 = vmatpush1.bf16.msra.mxu1 %v624_v11  ;;  %s235_s5 = scalar_lea.vmem %s791_s3, %s540_s14 }
  0x24   : > { %381 = vmatprep.subr.bf16.mxu0 %v668_v9  ;;  %580 = vmatprep.subr.bf16.mxu1 %v668_v9 }
  0x27   : > { %382 = vmatpush1.bf16.msra.mxu0 %v625_v12  ;;  %590 = vmatpush1.bf16.msra.mxu1 %v625_v12 }
  0x28   : > { %383 = vmatprep.subr.bf16.mxu0 %v668_v9  ;;  %581 = vmatprep.subr.bf16.mxu1 %v668_v9 }
  0x2b   : > { %384 = vmatpush1.bf16.msra.mxu0 %v626_v15  ;;  %591 = vmatpush1.bf16.msra.mxu1 %v626_v15 }
  0x2c   : > { %385 = vmatprep.subr.bf16.mxu0 %v668_v9  ;;  %582 = vmatprep.subr.bf16.mxu1 %v668_v9 }
  0x2f   : > { %386 = vmatpush1.bf16.msra.mxu0 %v627_v16  ;;  %592 = vmatpush1.bf16.msra.mxu1 %v627_v16 }
  0x30   : > { %387 = vmatprep.subr.bf16.mxu0 %v668_v9  ;;  %583 = vmatprep.subr.bf16.mxu1 %v668_v9 }
  0x33   : > { %388 = vmatpush1.bf16.msra.mxu0 %v628_v17  ;;  %593 = vmatpush1.bf16.msra.mxu1 %v628_v17 }
  0x34   : > { %389 = vmatprep.subr.bf16.mxu0 %v668_v9  ;;  %584 = vmatprep.subr.bf16.mxu1 %v668_v9 }
  0x37   : > { %390 = vmatpush1.bf16.msra.mxu0 %v629_v18  ;;  %594 = vmatpush1.bf16.msra.mxu1 %v629_v18 }
  0x38   : > { %391 = vmatprep.subr.bf16.mxu0 %v668_v9  ;;  %585 = vmatprep.subr.bf16.mxu1 %v668_v9 }
  0x3b   : > { %392 = vmatpush1.bf16.msra.mxu0 %v630_v19  ;;  %595 = vmatpush1.bf16.msra.mxu1 %v630_v19 }
  0x3c   : > { %393 = vmatprep.subr.bf16.mxu0 %v668_v9  ;;  %586 = vmatprep.subr.bf16.mxu1 %v668_v9 }
  0x3f   : > { %394 = vmatpush1.bf16.msra.mxu0 %v373_v21  ;;  %596 = vmatpush1.bf16.msra.mxu1 %v373_v21 }
  0x42   : > { %408 = vmatmul.mubr.bf16.vlgmr.msra.gmra.mrb[0].mxu0 %v632_v22  ;;  %424 = vmatmul.mubr.bf16.vlgmr.msra.gmra.mrb[0].mxu1 %v635_v23 }
  0x43   : > { %560 = vmatprep.mubr.msk.bf16.mxu0 %vm358_vm0, %v638_v24  ;;  %562 = vmatprep.mubr.msk.bf16.mxu1 %vm358_vm0, %v640_v25 }
  0x4a   : > { %416 = vmatmul.mubr.bf16.gmra.mrb[4].mxu0 %v642_v26  ;;  %432 = vmatmul.mubr.bf16.gmra.mrb[4].mxu1 %v643_v27 }
 0x115   : > { %v409_v28 = vpop.f32.mrb[0].mxu0  ;;  %v425_v29 = vpop.f32.mrb[0].mxu1 }
 0x116   : > { %v440_v30 = vmax.f32 %v409_v28, %v425_v29  ;;  %v411_v31 = vpop.f32.mrb[1].mxu0  ;;  %v427_v32 = vpop.f32.mrb[1].mxu1 }
 0x117   : > { %v412_v33 = vpop.f32.mrb[2].mxu0  ;;  %v428_v34 = vpop.f32.mrb[2].mxu1 }
 0x118   : > { %v443_v35 = vmax.f32 %v412_v33, %v428_v34  ;;  %v414_v36 = vpop.f32.mrb[3].mxu0  ;;  %v430_v37 = vpop.f32.mrb[3].mxu1 }
 0x11d   : > { %v417_v38 = vpop.f32.mrb[4].mxu0  ;;  %v433_v39 = vpop.f32.mrb[4].mxu1 }
 0x11e   : > { %v441_v40 = vmax.f32 %v417_v38, %v433_v39  ;;  %v419_v41 = vpop.f32.mrb[5].mxu0  ;;  %v435_v42 = vpop.f32.mrb[5].mxu1 }
 0x11f   : > { %v420_v44 = vpop.f32.mrb[6].mxu0  ;;  %v436_v45 = vpop.f32.mrb[6].mxu1 }
 0x120   : > { %v442_v46 = vmax.f32 %v440_v30, %v441_v40  ;;  %v444_v47 = vmax.f32 %v420_v44, %v436_v45  ;;  %v422_v48 = vpop.f32.mrb[7].mxu0  ;;  %v438_v49 = vpop.f32.mrb[7].mxu1 }
 0x122   : > { %v453_v50 = vadd.f32 %v563_v43, %v442_v46  ;;  %v445_v51 = vmax.f32 %v443_v35, %v444_v47 }
 0x124   : > { %v454_v52 = vadd.f32 %v563_v43, %v445_v51  ;;  %v455_v53 = vmax.f32 %v453_v50, 0.0 }
 0x126   : > { %v456_v54 = vmax.f32 %v454_v52, 0.0 }
 0x128   : > { %v575_v55 = vpack.c.bf16 %v456_v54, %v455_v53 }
 0x12a   : > { %576 = vst [vmem:[%s235_s5] sm:$0xff] %v575_v55  }
 0x12b PF: > { %p10_p9 = scmp.ge.s32.totalorder %s706_s16, 4   ;;  %s792_s12 = smov %s662_s13 }
 0x12c   : > { %s793_s13 = smov %s715_s19  ;;  %s794_s14 = smov %s706_s16 }
 0x12d   :  { %12 = sbr.rel (!%p10_p9) target bundleno = 2 (0x2), region = 105 }

// kernel: lenet_forward.5
= control target key start
LH: loop header
LB: loop body
LE: loop exit
PB: predicated region body
PF: predicated region fallthrough
CT: control target
= control target key end

     0   :  { %vm2233_vm0 = vmmov 0   ;;  %s2760_s1 = inlined_call_operand.vmem [shape: bf16[2048,128], index: 1, kind: input, shape index: {}]   ;;  %s2761_s0 = inlined_call_operand.vmem [shape: bf16[8,2048], index: 0, kind: input, shape index: {}]   ;;  %s2762_s3 = inlined_call_operand.vmem [shape: bf16[128,128], index: 3, kind: input, shape index: {}]   ;;  %s2763_s5 = inlined_call_operand.vmem [shape: bf16[128,128], index: 5, kind: input, shape index: {}]   ;;  %s2764_s2 = inlined_call_operand.vmem [shape: f32[1,128], index: 2, kind: input, shape index: {}]   ;;  %s2765_s4 = inlined_call_operand.vmem [shape: f32[1,128], index: 4, kind: input, shape index: {}]   ;;  %s2766_s6 = inlined_call_operand.vmem [shape: f32[1,128], index: 6, kind: input, shape index: {}]   ;;  %s2767_s7 = inlined_call_operand.vmem [shape: f32[8,128], index: 7, kind: output, shape index: {}]  }
   0x1   :  { %v2072_v0 = vld [vmem:[%s2760_s1 + $0x40] sm:$0xff]   ;;  %v2076_v4 = vld [vmem:[%s2760_s1 + $0x48] sm:$0xff]   ;;  %v2080_v8 = vld [vmem:[%s2760_s1 + $0x50] sm:$0xff]  }
   0x2   :  { %v2073_v1 = vld [vmem:[%s2760_s1 + $0xc0] sm:$0xff]   ;;  %1836 = vmatprep.subr.bf16.mxu0 %v2072_v0  ;;  %v2077_v5 = vld [vmem:[%s2760_s1 + $0xc8] sm:$0xff]   ;;  %v2081_v9 = vld [vmem:[%s2760_s1 + $0xd0] sm:$0xff]  }
   0x3   :  { %v2074_v2 = vld [vmem:[%s2760_s1] sm:$0xff]   ;;  %1858 = vmatprep.subr.bf16.mxu1 %v2073_v1  ;;  %v2078_v6 = vld [vmem:[%s2760_s1 + $0x8] sm:$0xff]   ;;  %v2082_v10 = vld [vmem:[%s2760_s1 + $0x10] sm:$0xff]  }
   0x4   :  { %v2075_v3 = vld [vmem:[%s2760_s1 + $0x80] sm:$0xff]   ;;  %1837 = vmatpush3.bf16.msra.mxu0 %v2074_v2  ;;  %v2079_v7 = vld [vmem:[%s2760_s1 + $0x88] sm:$0xff]   ;;  %v2083_v11 = vld [vmem:[%s2760_s1 + $0x90] sm:$0xff]  }
   0x5   :  { %1859 = vmatpush3.bf16.msra.mxu1 %v2075_v3  ;;  %1838 = vmatprep.subr.bf16.mxu0 %v2076_v4  ;;  %v2084_v12 = vld [vmem:[%s2760_s1 + $0x58] sm:$0xff]   ;;  %v2088_v16 = vld [vmem:[%s2760_s1 + $0x60] sm:$0xff]   ;;  %v2092_v20 = vld [vmem:[%s2760_s1 + $0x68] sm:$0xff]  }
   0x6   :  { %1860 = vmatprep.subr.bf16.mxu1 %v2077_v5  ;;  %v2085_v13 = vld [vmem:[%s2760_s1 + $0xd8] sm:$0xff]   ;;  %v2089_v17 = vld [vmem:[%s2760_s1 + $0xe0] sm:$0xff]   ;;  %v2093_v21 = vld [vmem:[%s2760_s1 + $0xe8] sm:$0xff]  }
   0x7   :  { %v2086_v14 = vld [vmem:[%s2760_s1 + $0x18] sm:$0xff]   ;;  %v2090_v18 = vld [vmem:[%s2760_s1 + $0x20] sm:$0xff]   ;;  %v2094_v22 = vld [vmem:[%s2760_s1 + $0x28] sm:$0xff]  }
   0x8   :  { %1839 = vmatpush3.bf16.msra.mxu0 %v2078_v6  ;;  %v2087_v15 = vld [vmem:[%s2760_s1 + $0x98] sm:$0xff]   ;;  %v2091_v19 = vld [vmem:[%s2760_s1 + $0xa0] sm:$0xff]   ;;  %v2095_v23 = vld [vmem:[%s2760_s1 + $0xa8] sm:$0xff]  }
   0x9   :  { %1861 = vmatpush3.bf16.msra.mxu1 %v2079_v7  ;;  %1840 = vmatprep.subr.bf16.mxu0 %v2080_v8  ;;  %v2096_v24 = vld [vmem:[%s2760_s1 + $0x70] sm:$0xff]   ;;  %v2100_v28 = vld [vmem:[%s2760_s1 + $0x78] sm:$0xff]   ;;  %v27_v32 = vld [vmem:[%s2761_s0] sm:$0xff] }
   0xa   :  { %1862 = vmatprep.subr.bf16.mxu1 %v2081_v9  ;;  %v2097_v25 = vld [vmem:[%s2760_s1 + $0xf0] sm:$0xff]   ;;  %v2101_v29 = vld [vmem:[%s2760_s1 + $0xf8] sm:$0xff]   ;;  %v28_v33 = vld [vmem:[%s2761_s0 + $0x8] sm:$0xff]  ;;  %v1674_v34 = vcombine.low %v27_v32, %v27_v32  ;;  %v1675_v35 = vcombine.high %v27_v32, %v27_v32 }
   0xb   :  { %v2098_v26 = vld [vmem:[%s2760_s1 + $0x30] sm:$0xff]   ;;  %v2102_v30 = vld [vmem:[%s2760_s1 + $0x38] sm:$0xff]   ;;  %v1676_v36 = vcombine.low %v28_v33, %v28_v33  ;;  %v1677_v37 = vcombine.high %v28_v33, %v28_v33  ;;  %v2108_v38 = vld [vmem:[%s2760_s1 + $0x140] sm:$0xff]  }
   0xc   :  { %1841 = vmatpush3.bf16.msra.mxu0 %v2082_v10  ;;  %v2099_v27 = vld [vmem:[%s2760_s1 + $0xb0] sm:$0xff]   ;;  %v2103_v31 = vld [vmem:[%s2760_s1 + $0xb8] sm:$0xff]   ;;  %v2109_v39 = vld [vmem:[%s2760_s1 + $0x1c0] sm:$0xff]   ;;  %1154 = vmatprep.mubr.bf16.mxu0 %v1675_v35 }
   0xd   :  { %1863 = vmatpush3.bf16.msra.mxu1 %v2083_v11  ;;  %1842 = vmatprep.subr.bf16.mxu0 %v2084_v12  ;;  %v2110_v40 = vld [vmem:[%s2760_s1 + $0x100] sm:$0xff]   ;;  %v2112_v42 = vld [vmem:[%s2760_s1 + $0x148] sm:$0xff]   ;;  %v2116_v46 = vld [vmem:[%s2760_s1 + $0x150] sm:$0xff]  }
   0xe   :  { %1864 = vmatprep.subr.bf16.mxu1 %v2085_v13  ;;  %1194 = vmatprep.mubr.bf16.mxu1 %v1677_v37  ;;  %v2111_v41 = vld [vmem:[%s2760_s1 + $0x180] sm:$0xff]   ;;  %v2113_v43 = vld [vmem:[%s2760_s1 + $0x1c8] sm:$0xff]   ;;  %v2117_v47 = vld [vmem:[%s2760_s1 + $0x1d0] sm:$0xff]  }
   0xf   :  { %v2114_v44 = vld [vmem:[%s2760_s1 + $0x108] sm:$0xff]   ;;  %v2118_v48 = vld [vmem:[%s2760_s1 + $0x110] sm:$0xff]   ;;  %v2120_v50 = vld [vmem:[%s2760_s1 + $0x158] sm:$0xff]  }
  0x10   :  { %1843 = vmatpush3.bf16.msra.mxu0 %v2086_v14  ;;  %v2115_v45 = vld [vmem:[%s2760_s1 + $0x188] sm:$0xff]   ;;  %v2119_v49 = vld [vmem:[%s2760_s1 + $0x190] sm:$0xff]   ;;  %v2121_v51 = vld [vmem:[%s2760_s1 + $0x1d8] sm:$0xff]  }
  0x11   :  { %1865 = vmatpush3.bf16.msra.mxu1 %v2087_v15  ;;  %1844 = vmatprep.subr.bf16.mxu0 %v2088_v16  ;;  %v2122_v52 = vld [vmem:[%s2760_s1 + $0x118] sm:$0xff]   ;;  %v2124_v54 = vld [vmem:[%s2760_s1 + $0x160] sm:$0xff]   ;;  %v2128_v58 = vld [vmem:[%s2760_s1 + $0x168] sm:$0xff]  }
  0x12   :  { %1866 = vmatprep.subr.bf16.mxu1 %v2089_v17  ;;  %v2123_v53 = vld [vmem:[%s2760_s1 + $0x198] sm:$0xff]   ;;  %v2125_v55 = vld [vmem:[%s2760_s1 + $0x1e0] sm:$0xff]   ;;  %v2129_v59 = vld [vmem:[%s2760_s1 + $0x1e8] sm:$0xff]  }
  0x13   :  { %v2126_v56 = vld [vmem:[%s2760_s1 + $0x120] sm:$0xff]   ;;  %v2130_v60 = vld [vmem:[%s2760_s1 + $0x128] sm:$0xff]   ;;  %v2132_v62 = vld [vmem:[%s2760_s1 + $0x170] sm:$0xff]  }
  0x14   :  { %1845 = vmatpush3.bf16.msra.mxu0 %v2090_v18  ;;  %v2127_v57 = vld [vmem:[%s2760_s1 + $0x1a0] sm:$0xff]   ;;  %v2131_v61 = vld [vmem:[%s2760_s1 + $0x1a8] sm:$0xff]   ;;  %v2133_v63 = vld [vmem:[%s2760_s1 + $0x1f0] sm:$0xff]  }
  0x15   :  { %1867 = vmatpush3.bf16.msra.mxu1 %v2091_v19  ;;  %1846 = vmatprep.subr.bf16.mxu0 %v2092_v20  ;;  %v2134_v0 = vld [vmem:[%s2760_s1 + $0x130] sm:$0xff]   ;;  %v2136_v2 = vld [vmem:[%s2760_s1 + $0x178] sm:$0xff]   ;;  %v2144_v12 = vld [vmem:[%s2760_s1 + $0x240] sm:$0xff]  }
  0x16   :  { %1868 = vmatprep.subr.bf16.mxu1 %v2093_v21  ;;  %v2135_v1 = vld [vmem:[%s2760_s1 + $0x1b0] sm:$0xff]   ;;  %v2137_v3 = vld [vmem:[%s2760_s1 + $0x1f8] sm:$0xff]   ;;  %v2145_v13 = vld [vmem:[%s2760_s1 + $0x2c0] sm:$0xff]  }
  0x17   :  { %v2138_v4 = vld [vmem:[%s2760_s1 + $0x138] sm:$0xff]   ;;  %v29_v6 = vld [vmem:[%s2761_s0 + $0x10] sm:$0xff]  ;;  %v2146_v14 = vld [vmem:[%s2760_s1 + $0x200] sm:$0xff]  }
  0x18   :  { %1847 = vmatpush3.bf16.msra.mxu0 %v2094_v22  ;;  %v2139_v5 = vld [vmem:[%s2760_s1 + $0x1b8] sm:$0xff]   ;;  %v1678_v7 = vcombine.low %v29_v6, %v29_v6  ;;  %v1679_v8 = vcombine.high %v29_v6, %v29_v6  ;;  %v2147_v15 = vld [vmem:[%s2760_s1 + $0x280] sm:$0xff]   ;;  %v2148_v16 = vld [vmem:[%s2760_s1 + $0x248] sm:$0xff]  }
  0x19   :  { %1869 = vmatpush3.bf16.msra.mxu1 %v2095_v23  ;;  %1848 = vmatprep.subr.bf16.mxu0 %v2096_v24  ;;  %v30_v9 = vld [vmem:[%s2761_s0 + $0x18] sm:$0xff]  ;;  %v2149_v17 = vld [vmem:[%s2760_s1 + $0x2c8] sm:$0xff]   ;;  %v2152_v20 = vld [vmem:[%s2760_s1 + $0x250] sm:$0xff]  }
  0x1a   :  { %1870 = vmatprep.subr.bf16.mxu1 %v2097_v25  ;;  %v1680_v10 = vcombine.low %v30_v9, %v30_v9  ;;  %v1681_v11 = vcombine.high %v30_v9, %v30_v9  ;;  %v2150_v18 = vld [vmem:[%s2760_s1 + $0x208] sm:$0xff]   ;;  %v2153_v21 = vld [vmem:[%s2760_s1 + $0x2d0] sm:$0xff]   ;;  %v2156_v24 = vld [vmem:[%s2760_s1 + $0x258] sm:$0xff]  }
  0x1b   :  { %v2151_v19 = vld [vmem:[%s2760_s1 + $0x288] sm:$0xff]   ;;  %v2154_v22 = vld [vmem:[%s2760_s1 + $0x210] sm:$0xff]   ;;  %v2157_v25 = vld [vmem:[%s2760_s1 + $0x2d8] sm:$0xff]  }
  0x1c   :  { %1849 = vmatpush3.bf16.msra.mxu0 %v2098_v26  ;;  %v2155_v23 = vld [vmem:[%s2760_s1 + $0x290] sm:$0xff]   ;;  %v2158_v26 = vld [vmem:[%s2760_s1 + $0x218] sm:$0xff]   ;;  %v2164_v32 = vld [vmem:[%s2760_s1 + $0x268] sm:$0xff]  }
  0x1d   :  { %1871 = vmatpush3.bf16.msra.mxu1 %v2099_v27  ;;  %1850 = vmatprep.subr.bf16.mxu0 %v2100_v28  ;;  %v2159_v27 = vld [vmem:[%s2760_s1 + $0x298] sm:$0xff]   ;;  %v2160_v28 = vld [vmem:[%s2760_s1 + $0x260] sm:$0xff]   ;;  %v2165_v33 = vld [vmem:[%s2760_s1 + $0x2e8] sm:$0xff]  }
  0x1e   :  { %1872 = vmatprep.subr.bf16.mxu1 %v2101_v29  ;;  %v2161_v29 = vld [vmem:[%s2760_s1 + $0x2e0] sm:$0xff]   ;;  %v2167_v35 = vld [vmem:[%s2760_s1 + $0x2a8] sm:$0xff]   ;;  %v2169_v37 = vld [vmem:[%s2760_s1 + $0x2f0] sm:$0xff]  }
  0x1f   :  { %v2200_v6 = vld [vmem:[%s2760_s1 + $0x368] sm:$0xff]  }
  0x20   :  { %1851 = vmatpush3.bf16.msra.mxu0 %v2102_v30  ;;  %v2162_v30 = vld [vmem:[%s2760_s1 + $0x220] sm:$0xff]   ;;  %v2203_v9 = vld [vmem:[%s2760_s1 + $0x3a8] sm:$0xff]  }
  0x21   :  { %1873 = vmatpush3.bf16.msra.mxu1 %v2103_v31  ;;  %1880 = vmatprep.subr.bf16.mxu0 %v2108_v38  ;;  %v2163_v31 = vld [vmem:[%s2760_s1 + $0x2a0] sm:$0xff]   ;;  %v2170_v38 = vld [vmem:[%s2760_s1 + $0x230] sm:$0xff]  }
  0x22   :  { %1902 = vmatprep.subr.bf16.mxu1 %v2109_v39  ;;  %v2171_v39 = vld [vmem:[%s2760_s1 + $0x2b0] sm:$0xff]  }
  0x23   :  { %1155 = vmatmul.mubr.bf16.vlgmr.msra.gmra.mrb[0].mxu0 %v1674_v34  ;;  %v2166_v34 = vld [vmem:[%s2760_s1 + $0x228] sm:$0xff]  }
  0x24   :  { %1195 = vmatmul.mubr.bf16.vlgmr.msra.gmra.mrb[0].mxu1 %v1676_v36  ;;  %1881 = vmatpush3.bf16.msra.mxu0 %v2110_v40  ;;  %v2168_v36 = vld [vmem:[%s2760_s1 + $0x270] sm:$0xff]   ;;  %v2172_v40 = vld [vmem:[%s2760_s1 + $0x278] sm:$0xff]  }
  0x25   :  { %1903 = vmatpush3.bf16.msra.mxu1 %v2111_v41  ;;  %1882 = vmatprep.subr.bf16.mxu0 %v2112_v42  ;;  %v2173_v41 = vld [vmem:[%s2760_s1 + $0x2f8] sm:$0xff]  }
  0x26   :  { %1904 = vmatprep.subr.bf16.mxu1 %v2113_v43  ;;  %1234 = vmatprep.mubr.bf16.mxu0 %v1679_v8  ;;  %v2174_v42 = vld [vmem:[%s2760_s1 + $0x238] sm:$0xff]   ;;  %v2202_v8 = vld [vmem:[%s2760_s1 + $0x328] sm:$0xff]  }
  0x27   :  { %1274 = vmatprep.mubr.bf16.mxu1 %v1681_v11  ;;  %v2175_v43 = vld [vmem:[%s2760_s1 + $0x2b8] sm:$0xff]   ;;  %v2205_v11 = vld [vmem:[%s2760_s1 + $0x3f0] sm:$0xff]  }
  0x28   :  { %1883 = vmatpush3.bf16.msra.mxu0 %v2114_v44  ;;  %v31_v44 = vld [vmem:[%s2761_s0 + $0x20] sm:$0xff] }
  0x29   :  { %1905 = vmatpush3.bf16.msra.mxu1 %v2115_v45  ;;  %1884 = vmatprep.subr.bf16.mxu0 %v2116_v46  ;;  %v32_v45 = vld [vmem:[%s2761_s0 + $0x28] sm:$0xff]  ;;  %v1682_v46 = vcombine.low %v31_v44, %v31_v44 }
  0x2a   :  { %1906 = vmatprep.subr.bf16.mxu1 %v2117_v47  ;;  %v1683_v47 = vcombine.high %v31_v44, %v31_v44 }
  0x2c   :  { %1885 = vmatpush3.bf16.msra.mxu0 %v2118_v48  ;;  %v1684_v48 = vcombine.low %v32_v45, %v32_v45 }
  0x2d   :  { %1907 = vmatpush3.bf16.msra.mxu1 %v2119_v49  ;;  %1886 = vmatprep.subr.bf16.mxu0 %v2120_v50  ;;  %v1685_v49 = vcombine.high %v32_v45, %v32_v45  ;;  %v2180_v50 = vld [vmem:[%s2760_s1 + $0x340] sm:$0xff]  }
  0x2e   :  { %1908 = vmatprep.subr.bf16.mxu1 %v2121_v51  ;;  %v2181_v51 = vld [vmem:[%s2760_s1 + $0x3c0] sm:$0xff]  }
  0x30   :  { %1887 = vmatpush3.bf16.msra.mxu0 %v2122_v52  ;;  %v2182_v52 = vld [vmem:[%s2760_s1 + $0x300] sm:$0xff]  }
  0x31   :  { %1909 = vmatpush3.bf16.msra.mxu1 %v2123_v53  ;;  %1888 = vmatprep.subr.bf16.mxu0 %v2124_v54  ;;  %v2183_v53 = vld [vmem:[%s2760_s1 + $0x380] sm:$0xff]   ;;  %v2184_v54 = vld [vmem:[%s2760_s1 + $0x348] sm:$0xff]  }
  0x32   :  { %1910 = vmatprep.subr.bf16.mxu1 %v2125_v55  ;;  %v2185_v55 = vld [vmem:[%s2760_s1 + $0x3c8] sm:$0xff]  }
  0x34   :  { %1889 = vmatpush3.bf16.msra.mxu0 %v2126_v56  ;;  %v2186_v56 = vld [vmem:[%s2760_s1 + $0x308] sm:$0xff]  }
  0x35   :  { %1911 = vmatpush3.bf16.msra.mxu1 %v2127_v57  ;;  %1890 = vmatprep.subr.bf16.mxu0 %v2128_v58  ;;  %v2187_v57 = vld [vmem:[%s2760_s1 + $0x388] sm:$0xff]   ;;  %v2188_v58 = vld [vmem:[%s2760_s1 + $0x350] sm:$0xff]  }
  0x36   :  { %1912 = vmatprep.subr.bf16.mxu1 %v2129_v59  ;;  %v2189_v59 = vld [vmem:[%s2760_s1 + $0x3d0] sm:$0xff]  }
  0x38   :  { %1891 = vmatpush3.bf16.msra.mxu0 %v2130_v60  ;;  %v2190_v60 = vld [vmem:[%s2760_s1 + $0x310] sm:$0xff]  }
  0x39   :  { %1913 = vmatpush3.bf16.msra.mxu1 %v2131_v61  ;;  %1892 = vmatprep.subr.bf16.mxu0 %v2132_v62  ;;  %v2191_v61 = vld [vmem:[%s2760_s1 + $0x390] sm:$0xff]   ;;  %v2192_v62 = vld [vmem:[%s2760_s1 + $0x358] sm:$0xff]  }
  0x3a   :  { %1914 = vmatprep.subr.bf16.mxu1 %v2133_v63  ;;  %v2193_v63 = vld [vmem:[%s2760_s1 + $0x3d8] sm:$0xff]  }
  0x3c   :  { %1893 = vmatpush3.bf16.msra.mxu0 %v2134_v0  ;;  %v2194_v0 = vld [vmem:[%s2760_s1 + $0x318] sm:$0xff]  }
  0x3d   :  { %1915 = vmatpush3.bf16.msra.mxu1 %v2135_v1  ;;  %1894 = vmatprep.subr.bf16.mxu0 %v2136_v2  ;;  %v2195_v1 = vld [vmem:[%s2760_s1 + $0x398] sm:$0xff]   ;;  %v2196_v2 = vld [vmem:[%s2760_s1 + $0x360] sm:$0xff]  }
  0x3e   :  { %1916 = vmatprep.subr.bf16.mxu1 %v2137_v3  ;;  %v2197_v3 = vld [vmem:[%s2760_s1 + $0x3e0] sm:$0xff]  }
  0x40   :  { %1895 = vmatpush3.bf16.msra.mxu0 %v2138_v4  ;;  %v2198_v4 = vld [vmem:[%s2760_s1 + $0x320] sm:$0xff]  }
  0x41   :  { %1917 = vmatpush3.bf16.msra.mxu1 %v2139_v5  ;;  %1924 = vmatprep.subr.bf16.mxu0 %v2144_v12  ;;  %v2199_v5 = vld [vmem:[%s2760_s1 + $0x3a0] sm:$0xff]   ;;  %v2206_v12 = vld [vmem:[%s2760_s1 + $0x330] sm:$0xff]  }
  0x42   :  { %1946 = vmatprep.subr.bf16.mxu1 %v2145_v13  ;;  %v2207_v13 = vld [vmem:[%s2760_s1 + $0x3b0] sm:$0xff]  }
  0x43   :  { %1235 = vmatmul.mubr.bf16.vlgmr.msra.gmra.mrb[4].mxu0 %v1678_v7  ;;  %v2201_v7 = vld [vmem:[%s2760_s1 + $0x3e8] sm:$0xff]  }
  0x44   :  { %1275 = vmatmul.mubr.bf16.vlgmr.msra.gmra.mrb[4].mxu1 %v1680_v10  ;;  %1925 = vmatpush3.bf16.msra.mxu0 %v2146_v14  ;;  %v2204_v10 = vld [vmem:[%s2760_s1 + $0x370] sm:$0xff]   ;;  %v2208_v14 = vld [vmem:[%s2760_s1 + $0x378] sm:$0xff]  }
  0x45   :  { %1947 = vmatpush3.bf16.msra.mxu1 %v2147_v15  ;;  %1926 = vmatprep.subr.bf16.mxu0 %v2148_v16  ;;  %v2209_v15 = vld [vmem:[%s2760_s1 + $0x3f8] sm:$0xff]  }
  0x46   :  { %1948 = vmatprep.subr.bf16.mxu1 %v2149_v17  ;;  %1314 = vmatprep.mubr.bf16.mxu0 %v1683_v47  ;;  %v2210_v16 = vld [vmem:[%s2760_s1 + $0x338] sm:$0xff]  }
  0x47   :  { %1354 = vmatprep.mubr.bf16.mxu1 %v1685_v49  ;;  %v2211_v17 = vld [vmem:[%s2760_s1 + $0x3b8] sm:$0xff]  }
  0x48   :  { %1927 = vmatpush3.bf16.msra.mxu0 %v2150_v18  ;;  %v33_v18 = vld [vmem:[%s2761_s0 + $0x30] sm:$0xff] }
  0x49   :  { %1949 = vmatpush3.bf16.msra.mxu1 %v2151_v19  ;;  %1928 = vmatprep.subr.bf16.mxu0 %v2152_v20  ;;  %v34_v19 = vld [vmem:[%s2761_s0 + $0x38] sm:$0xff]  ;;  %v1686_v20 = vcombine.low %v33_v18, %v33_v18 }
  0x4a   :  { %1950 = vmatprep.subr.bf16.mxu1 %v2153_v21  ;;  %v1687_v21 = vcombine.high %v33_v18, %v33_v18 }
  0x4c   :  { %1929 = vmatpush3.bf16.msra.mxu0 %v2154_v22  ;;  %v1688_v22 = vcombine.low %v34_v19, %v34_v19 }
  0x4d   :  { %1951 = vmatpush3.bf16.msra.mxu1 %v2155_v23  ;;  %1930 = vmatprep.subr.bf16.mxu0 %v2156_v24  ;;  %v1689_v23 = vcombine.high %v34_v19, %v34_v19  ;;  %v2232_v24 = vmov 0.0  }
  0x4e   :  { %1952 = vmatprep.subr.bf16.mxu1 %v2157_v25  ;;  %v2216_v25 = vld [vmem:[%s2762_s3] sm:$0xff]  }
  0x50   :  { %1931 = vmatpush3.bf16.msra.mxu0 %v2158_v26  ;;  %v2217_v26 = vld [vmem:[%s2762_s3 + $0x8] sm:$0xff]  }
  0x51   :  { %1953 = vmatpush3.bf16.msra.mxu1 %v2159_v27  ;;  %1932 = vmatprep.subr.bf16.mxu0 %v2160_v28  ;;  %v2218_v27 = vld [vmem:[%s2762_s3 + $0x10] sm:$0xff]   ;;  %v2219_v28 = vld [vmem:[%s2762_s3 + $0x18] sm:$0xff]  }
  0x52   :  { %1954 = vmatprep.subr.bf16.mxu1 %v2161_v29  ;;  %v2220_v29 = vld [vmem:[%s2762_s3 + $0x20] sm:$0xff]  }
  0x54   :  { %1933 = vmatpush3.bf16.msra.mxu0 %v2162_v30  ;;  %v2221_v30 = vld [vmem:[%s2762_s3 + $0x28] sm:$0xff]  }
  0x55   :  { %1955 = vmatpush3.bf16.msra.mxu1 %v2163_v31  ;;  %1934 = vmatprep.subr.bf16.mxu0 %v2164_v32  ;;  %v2222_v31 = vld [vmem:[%s2762_s3 + $0x30] sm:$0xff]   ;;  %v2223_v32 = vld [vmem:[%s2762_s3 + $0x38] sm:$0xff]  }
  0x56   :  { %1956 = vmatprep.subr.bf16.mxu1 %v2165_v33  ;;  %v2224_v33 = vld [vmem:[%s2763_s5] sm:$0xff]  }
  0x58   :  { %1935 = vmatpush3.bf16.msra.mxu0 %v2166_v34  ;;  %v2225_v34 = vld [vmem:[%s2763_s5 + $0x8] sm:$0xff]  }
  0x59   :  { %1957 = vmatpush3.bf16.msra.mxu1 %v2167_v35  ;;  %1936 = vmatprep.subr.bf16.mxu0 %v2168_v36  ;;  %v2226_v35 = vld [vmem:[%s2763_s5 + $0x10] sm:$0xff]   ;;  %v2227_v36 = vld [vmem:[%s2763_s5 + $0x18] sm:$0xff]  }
  0x5a   :  { %1958 = vmatprep.subr.bf16.mxu1 %v2169_v37  ;;  %v2228_v37 = vld [vmem:[%s2763_s5 + $0x20] sm:$0xff]  }
  0x5c   :  { %1937 = vmatpush3.bf16.msra.mxu0 %v2170_v38 }
  0x5d   :  { %1959 = vmatpush3.bf16.msra.mxu1 %v2171_v39  ;;  %1938 = vmatprep.subr.bf16.mxu0 %v2172_v40  ;;  %v1673_v40 = vld [vmem:[%s2764_s2] ss:$0 sm:$0xff] }
  0x5e   :  { %1960 = vmatprep.subr.bf16.mxu1 %v2173_v41 }
  0x60   :  { %1939 = vmatpush3.bf16.msra.mxu0 %v2174_v42 }
  0x61   :  { %1961 = vmatpush3.bf16.msra.mxu1 %v2175_v43  ;;  %1968 = vmatprep.subr.bf16.mxu0 %v2180_v50  ;;  %v2229_v43 = vld [vmem:[%s2763_s5 + $0x28] sm:$0xff]  }
  0x62   :  { %1990 = vmatprep.subr.bf16.mxu1 %v2181_v51 }
  0x63   :  { %1315 = vmatmul.mubr.bf16.vlgmr.msra.gmra.mrb[8].mxu0 %v1682_v46 }
  0x64   :  { %1355 = vmatmul.mubr.bf16.vlgmr.msra.gmra.mrb[8].mxu1 %v1684_v48  ;;  %1969 = vmatpush3.bf16.msra.mxu0 %v2182_v52 }
  0x65   :  { %1991 = vmatpush3.bf16.msra.mxu1 %v2183_v53  ;;  %1970 = vmatprep.subr.bf16.mxu0 %v2184_v54 }
  0x66   :  { %1992 = vmatprep.subr.bf16.mxu1 %v2185_v55  ;;  %1394 = vmatprep.mubr.bf16.mxu0 %v1687_v21 }
  0x67   :  { %1434 = vmatprep.mubr.bf16.mxu1 %v1689_v23 }
  0x68   :  { %1971 = vmatpush3.bf16.msra.mxu0 %v2186_v56 }
  0x69   :  { %1993 = vmatpush3.bf16.msra.mxu1 %v2187_v57  ;;  %1972 = vmatprep.subr.bf16.mxu0 %v2188_v58 }
  0x6a   :  { %1994 = vmatprep.subr.bf16.mxu1 %v2189_v59 }
  0x6c   :  { %1973 = vmatpush3.bf16.msra.mxu0 %v2190_v60 }
  0x6d   :  { %1995 = vmatpush3.bf16.msra.mxu1 %v2191_v61  ;;  %1974 = vmatprep.subr.bf16.mxu0 %v2192_v62 }
  0x6e   :  { %1996 = vmatprep.subr.bf16.mxu1 %v2193_v63 }
  0x70   :  { %1975 = vmatpush3.bf16.msra.mxu0 %v2194_v0 }
  0x71   :  { %1997 = vmatpush3.bf16.msra.mxu1 %v2195_v1  ;;  %1976 = vmatprep.subr.bf16.mxu0 %v2196_v2 }
  0x72   :  { %1998 = vmatprep.subr.bf16.mxu1 %v2197_v3 }
  0x74   :  { %1977 = vmatpush3.bf16.msra.mxu0 %v2198_v4 }
  0x75   :  { %1999 = vmatpush3.bf16.msra.mxu1 %v2199_v5  ;;  %1978 = vmatprep.subr.bf16.mxu0 %v2200_v6 }
  0x76   :  { %2000 = vmatprep.subr.bf16.mxu1 %v2201_v7 }
  0x78   :  { %1979 = vmatpush3.bf16.msra.mxu0 %v2202_v8 }
  0x79   :  { %2001 = vmatpush3.bf16.msra.mxu1 %v2203_v9  ;;  %1980 = vmatprep.subr.bf16.mxu0 %v2204_v10 }
  0x7a   :  { %2002 = vmatprep.subr.bf16.mxu1 %v2205_v11 }
  0x7c   :  { %1981 = vmatpush3.bf16.msra.mxu0 %v2206_v12 }
  0x7d   :  { %2003 = vmatpush3.bf16.msra.mxu1 %v2207_v13  ;;  %1982 = vmatprep.subr.bf16.mxu0 %v2208_v14 }
  0x7e   :  { %2004 = vmatprep.subr.bf16.mxu1 %v2209_v15 }
  0x80   :  { %1983 = vmatpush3.bf16.msra.mxu0 %v2210_v16 }
  0x81   :  { %2005 = vmatpush3.bf16.msra.mxu1 %v2211_v17  ;;  %2030 = vmatprep.subr.bf16.mxu0 %v2232_v24 }
  0x82   :  { %2050 = vmatprep.subr.bf16.mxu1 %v2232_v24 }
  0x83   :  { %1395 = vmatmul.mubr.bf16.vlgmr.msra.gmra.mrb[12].mxu0 %v1686_v20 }
  0x84   :  { %1435 = vmatmul.mubr.bf16.vlgmr.msra.gmra.mrb[12].mxu1 %v1688_v22  ;;  %2031 = vmatpush3.bf16.msra.mxu0 %v2216_v25 }
  0x85   :  { %2032 = vmatprep.subr.bf16.mxu0 %v2232_v24  ;;  %2046 = vmatprep.mubr.msk.bf16.mxu0 %vm2233_vm0, %v2232_v24 }
  0x86   :  { %2066 = vmatprep.mubr.msk.bf16.mxu1 %vm2233_vm0, %v2232_v24  ;;  %2051 = vmatpush3.bf16.msra.mxu1 %v2224_v33 }
  0x87   :  { %2052 = vmatprep.subr.bf16.mxu1 %v2232_v24 }
  0x88   :  { %2033 = vmatpush3.bf16.msra.mxu0 %v2217_v26 }
  0x89   :  { %2034 = vmatprep.subr.bf16.mxu0 %v2232_v24 }
  0x8a   :  { %2053 = vmatpush3.bf16.msra.mxu1 %v2225_v34 }
  0x8b   :  { %2054 = vmatprep.subr.bf16.mxu1 %v2232_v24 }
  0x8c   :  { %2035 = vmatpush3.bf16.msra.mxu0 %v2218_v27  ;;  %v2230_v27 = vld [vmem:[%s2763_s5 + $0x30] sm:$0xff]  }
  0x8d   :  { %2036 = vmatprep.subr.bf16.mxu0 %v2232_v24 }
  0x8e   :  { %2055 = vmatpush3.bf16.msra.mxu1 %v2226_v35 }
  0x8f   :  { %2056 = vmatprep.subr.bf16.mxu1 %v2232_v24 }
  0x90   :  { %2037 = vmatpush3.bf16.msra.mxu0 %v2219_v28  ;;  %v2231_v28 = vld [vmem:[%s2763_s5 + $0x38] sm:$0xff]  }
  0x91   :  { %2038 = vmatprep.subr.bf16.mxu0 %v2232_v24 }
  0x92   :  { %2057 = vmatpush3.bf16.msra.mxu1 %v2227_v36 }
  0x93   :  { %2058 = vmatprep.subr.bf16.mxu1 %v2232_v24 }
  0x94   :  { %2039 = vmatpush3.bf16.msra.mxu0 %v2220_v29  ;;  %v1818_v29 = vld [vmem:[%s2765_s4] ss:$0 sm:$0xff] }
  0x95   :  { %2040 = vmatprep.subr.bf16.mxu0 %v2232_v24 }
  0x96   :  { %2059 = vmatpush3.bf16.msra.mxu1 %v2228_v37 }
  0x97   :  { %2060 = vmatprep.subr.bf16.mxu1 %v2232_v24 }
  0x98   :  { %2041 = vmatpush3.bf16.msra.mxu0 %v2221_v30 }
  0x99   :  { %2042 = vmatprep.subr.bf16.mxu0 %v2232_v24 }
  0x9a   :  { %2061 = vmatpush3.bf16.msra.mxu1 %v2229_v43 }
  0x9b   :  { %2062 = vmatprep.subr.bf16.mxu1 %v2232_v24 }
  0x9c   :  { %2043 = vmatpush3.bf16.msra.mxu0 %v2222_v31 }
  0x9d   :  { %2044 = vmatprep.subr.bf16.mxu0 %v2232_v24 }
  0x9e   :  { %2063 = vmatpush3.bf16.msra.mxu1 %v2230_v27 }
  0x9f   :  { %2064 = vmatprep.subr.bf16.mxu1 %v2232_v24  ;;  %v1827_v24 = vld [vmem:[%s2766_s6] ss:$0 sm:$0xff] }
  0xa0   :  { %2045 = vmatpush3.bf16.msra.mxu0 %v2223_v32 }
  0xa2   :  { %2065 = vmatpush3.bf16.msra.mxu1 %v2231_v28 }
  0xf6   :  { %v1852_v38 = vpop.f32.mrb[0].mxu0 }
  0xf7   :  { %v1874_v39 = vpop.f32.mrb[0].mxu1  ;;  %v1853_v41 = vpop.f32.mrb[1].mxu0 }
  0xf8   :  { %v1875_v42 = vpop.f32.mrb[1].mxu1  ;;  %v1854_v44 = vadd.f32 %v1853_v41, %v1852_v38  ;;  %v1855_v46 = vpop.f32.mrb[2].mxu0 }
  0xf9   :  { %v1876_v45 = vadd.f32 %v1875_v42, %v1874_v39  ;;  %v1877_v47 = vpop.f32.mrb[2].mxu1  ;;  %v1856_v48 = vpop.f32.mrb[3].mxu0 }
  0xfa   :  { %v1878_v49 = vpop.f32.mrb[3].mxu1  ;;  %v1157_v50 = vadd.f32 %v1854_v44, %v1673_v40 }
  0xfc   :  { %v1197_v51 = vadd.f32 %v1876_v45, %v1157_v50 }
 0x116   :  { %v1896_v52 = vpop.f32.mrb[4].mxu0 }
 0x117   :  { %v1918_v53 = vpop.f32.mrb[4].mxu1  ;;  %v1897_v54 = vpop.f32.mrb[5].mxu0 }
 0x118   :  { %v1919_v55 = vpop.f32.mrb[5].mxu1  ;;  %v1898_v56 = vadd.f32 %v1897_v54, %v1896_v52  ;;  %v1899_v58 = vpop.f32.mrb[6].mxu0 }
 0x119   :  { %v1920_v57 = vadd.f32 %v1919_v55, %v1918_v53  ;;  %v1921_v59 = vpop.f32.mrb[6].mxu1  ;;  %v1900_v60 = vpop.f32.mrb[7].mxu0 }
 0x11a   :  { %v1922_v61 = vpop.f32.mrb[7].mxu1  ;;  %v1237_v62 = vadd.f32 %v1898_v56, %v1197_v51 }
 0x11c   :  { %v1277_v63 = vadd.f32 %v1920_v57, %v1237_v62 }
 0x136   :  { %v1940_v0 = vpop.f32.mrb[8].mxu0 }
 0x137   :  { %v1962_v1 = vpop.f32.mrb[8].mxu1  ;;  %v1941_v2 = vpop.f32.mrb[9].mxu0 }
 0x138   :  { %v1942_v3 = vadd.f32 %v1941_v2, %v1940_v0  ;;  %v1963_v4 = vpop.f32.mrb[9].mxu1  ;;  %v1943_v5 = vpop.f32.mrb[10].mxu0 }
 0x139   :  { %v1964_v6 = vadd.f32 %v1963_v4, %v1962_v1  ;;  %v1965_v7 = vpop.f32.mrb[10].mxu1  ;;  %v1944_v8 = vpop.f32.mrb[11].mxu0 }
 0x13a   :  { %v1317_v9 = vadd.f32 %v1942_v3, %v1277_v63  ;;  %v1966_v10 = vpop.f32.mrb[11].mxu1 }
 0x13c   :  { %v1357_v11 = vadd.f32 %v1964_v6, %v1317_v9 }
 0x156   :  { %v1984_v12 = vpop.f32.mrb[12].mxu0 }
 0x157   :  { %v2006_v13 = vpop.f32.mrb[12].mxu1  ;;  %v1985_v14 = vpop.f32.mrb[13].mxu0 }
 0x158   :  { %v1986_v15 = vadd.f32 %v1985_v14, %v1984_v12  ;;  %v2007_v16 = vpop.f32.mrb[13].mxu1  ;;  %v1987_v17 = vpop.f32.mrb[14].mxu0 }
 0x159   :  { %v2008_v18 = vadd.f32 %v2007_v16, %v2006_v13  ;;  %v2009_v19 = vpop.f32.mrb[14].mxu1  ;;  %v1988_v20 = vpop.f32.mrb[15].mxu0 }
 0x15a   :  { %v1397_v21 = vadd.f32 %v1986_v15, %v1357_v11  ;;  %v2010_v22 = vpop.f32.mrb[15].mxu1 }
 0x15c   :  { %v1437_v23 = vadd.f32 %v2008_v18, %v1397_v21 }
 0x15e   :  { %v1442_v25 = vmax.f32 %v1437_v23, 0.0 }
 0x160   :  { %v1443_v26 = vpack.c.bf16 %v1442_v25, %v1442_v25 }
 0x162   :  { %2047 = vmatmul.mubr.bf16.vlgmr.msra.gmra.mrb[16].mxu0 %v1443_v26 }
 0x235   :  { %v1549_v30 = vpop.f32.mrb[16].mxu0 }
 0x236   :  { %v1550_v31 = vadd.f32 %v1818_v29, %v1549_v30  ;;  %v2048_v32 = vpop.f32.mrb[17].mxu0 }
 0x237   :  { %v1552_v33 = vpop.f32.mrb[18].mxu0 }
 0x238   :  { %v1555_v34 = vmax.f32 %v1550_v31, 0.0  ;;  %v2049_v35 = vpop.f32.mrb[19].mxu0 }
 0x23a   :  { %v1556_v36 = vpack.c.bf16 %v1555_v34, %v1555_v34 }
 0x23c   :  { %2067 = vmatmul.mubr.bf16.vlgmr.msra.gmra.mrb[16].mxu1 %v1556_v36 }
 0x30f   :  { %v1662_v37 = vpop.f32.mrb[16].mxu1 }
 0x310   :  { %v1663_v38 = vadd.f32 %v1827_v24, %v1662_v37  ;;  %v2068_v39 = vpop.f32.mrb[17].mxu1 }
 0x311   :  { %v1665_v40 = vpop.f32.mrb[18].mxu1 }
 0x312   :  { %1668 = vst [vmem:[%s2767_s7] sm:$0xff] %v1663_v38  ;;  %v2069_v41 = vpop.f32.mrb[19].mxu1 }

</bundles_post_ra>
